<compile_context>
chip_gen: v7x
topology: tpu7x:2x2x1
jax: 0.10.0
libtpu: 0.0.40
codegen_flags: <defaults>
</compile_context>

<pallas_src>
import functools

import jax
import jax.numpy as jnp
from jax import lax
from jax.experimental import pallas as pl
from jax.experimental.pallas import tpu as pltpu


def _round_up(x, m):
    return ((x + m - 1) // m) * m


def _pick_row_tile(h_out, w_out, k_dim, coutp, max_rows=1024, byte_budget=6 << 20):
    """Largest divisor TH of h_out whose (TH*w_out) row tile keeps the im2col
    scratch + accumulator within `byte_budget` and is (8,128)-layout legal."""
    candidates = [th for th in range(1, h_out + 1)
                  if h_out % th == 0 and ((th * w_out) % 8 == 0 or th == h_out)]
    good = [th for th in candidates
            if th * w_out <= max_rows
            and th * w_out * (2 * k_dim + 6 * coutp) <= byte_budget]
    if good:
        return max(good)
    return min(candidates)          # fall back to the smallest legal tile


def _conv_bn_leaky_kernel(x_ref, w_ref, shift_ref, o_ref, lhs_ref, *,
                          KH, KW, sh, sw, TH, W_out, Cinp, slope):
    """One (batch element, output-row tile) grid step.

    x_ref     : (Hg, Wg, sh*sw*Cinp)   bf16  space-to-depth padded image (resident)
    w_ref     : (KH*KW*Cinp, Coutp)    bf16  BN-scale-folded weights
    shift_ref : (1, Coutp)             f32   BN shift
    o_ref     : (TH*W_out, Coutp)      bf16  output row tile
    lhs_ref   : (TH*W_out, KH*KW*Cinp) bf16  VMEM scratch: im2col patch matrix
    """
    t = pl.program_id(1)
    i0 = pl.multiple_of(t * TH, TH)            # first output row of this tile
    mt = TH * W_out

    # Build the (Mt, K) im2col matrix with unit-stride, 128-lane-aligned copies.
    for kh in range(KH):
        for kw in range(KW):
            tap = kh * KW + kw
            c0 = ((kh % sh) * sw + (kw % sw)) * Cinp
            patch = x_ref[pl.ds(i0 + kh // sh, TH),
                          (kw // sw):(kw // sw) + W_out,
                          c0:c0 + Cinp]                       # (TH, W_out, Cinp)
            lhs_ref[:, tap * Cinp:(tap + 1) * Cinp] = patch.reshape(mt, Cinp)

    # Single big-K matmul: accumulation stays in the MXU result path.
    acc = jnp.dot(lhs_ref[...], w_ref[...], preferred_element_type=jnp.float32)

    y = acc + shift_ref[...]                   # folded-BN shift  (Mt,Coutp)+(1,Coutp)
    y = jnp.maximum(y, y * slope)              # LeakyReLU (slope < 1)
    o_ref[...] = y.astype(o_ref.dtype)


def conv2d_batch_leaky(x_nchw, weight, gamma, beta, running_mean, running_var,
                       *, stride=1, leaky_slope=0.1, eps=1e-5, row_block=None):
    """
    x_nchw : (N, Cin, H, W)      float32
    weight : (Cout, Cin, KH, KW) float32  (PyTorch conv weight layout)
    gamma, beta, running_mean, running_var : (Cout,)
    returns (N, Cout, H_out, W_out) float32
    """
    N, Cin, H, W = x_nchw.shape
    Cout, _, KH, KW = weight.shape
    if isinstance(stride, (tuple, list)):
        sh, sw = int(stride[0]), int(stride[1])
    else:
        sh = sw = int(stride)
    ph, pw = KH // 2, KW // 2                   # PyTorch: padding = int(k/2)
    H_out = (H + 2 * ph - KH) // sh + 1
    W_out = (W + 2 * pw - KW) // sw + 1
    M = H_out * W_out

    Cinp = _round_up(Cin, 128)                  # lane-aligned contraction chunks
    Coutp = _round_up(Cout, 128)                # lane-dense output channels
    K = KH * KW * Cinp                          # fused contraction depth (mult. of 128)

    # ---- input prep: bf16 cast BEFORE padding, then space-to-depth ----------
    Hp, Wp = H + 2 * ph, W + 2 * pw
    Hp2, Wp2 = _round_up(Hp, sh), _round_up(Wp, sw)
    Hg, Wg = Hp2 // sh, Wp2 // sw
    Ctot = sh * sw * Cinp

    x = jnp.transpose(x_nchw, (0, 2, 3, 1)).astype(jnp.bfloat16)     # NHWC bf16
    x = jnp.pad(x, ((0, 0), (ph, Hp2 - H - ph), (pw, Wp2 - W - pw),
                    (0, Cinp - Cin)))
    # space-to-depth by (sh, sw):
    #   x_s2d[n, gh, gw, (dh*sw+dw)*Cinp + c] = x_pad[n, gh*sh+dh, gw*sw+dw, c]
    # -> every in-kernel slice becomes unit-stride and 128-lane aligned for any stride.
    x = x.reshape(N, Hg, sh, Wg, sw, Cinp)
    x = jnp.transpose(x, (0, 1, 3, 2, 4, 5)).reshape(N, Hg, Wg, Ctot)

    # ---- fold BN (inference) into the conv weights ---------------------------
    scale = gamma / jnp.sqrt(running_var + eps)                       # (Cout,)
    shift = beta - running_mean * scale
    w_scaled = weight * scale[:, None, None, None]                    # (Cout,Cin,KH,KW)
    w_mat = jnp.transpose(w_scaled, (2, 3, 1, 0))                     # (KH,KW,Cin,Cout)
    w_mat = jnp.pad(w_mat, ((0, 0), (0, 0), (0, Cinp - Cin), (0, Coutp - Cout)))
    w_mat = w_mat.reshape(K, Coutp).astype(jnp.bfloat16)
    shift_p = jnp.pad(shift, (0, Coutp - Cout)).reshape(1, Coutp).astype(jnp.float32)

    # ---- output-row tiling ----------------------------------------------------
    if row_block is None:
        TH = _pick_row_tile(H_out, W_out, K, Coutp)
    else:
        TH = int(row_block)
        assert H_out % TH == 0, "row_block must divide H_out"
    Mt = TH * W_out
    n_row_tiles = H_out // TH

    kernel = functools.partial(
        _conv_bn_leaky_kernel, KH=KH, KW=KW, sh=sh, sw=sw,
        TH=TH, W_out=W_out, Cinp=Cinp, slope=leaky_slope)

    # ---- VMEM budget: true double-buffered requirement + scratch + headroom --
    x_blk = Hg * Wg * Ctot * 2                      # bf16 image block
    w_blk = K * Coutp * 2                           # bf16 weights
    s_blk = max(8 * 128 * 4, Coutp * 4)             # f32 shift (tile-padded)
    o_blk = Mt * Coutp * 2                          # bf16 output tile
    lhs_blk = Mt * K * 2                            # im2col scratch (single copy)
    tmp = Mt * Coutp * 4 + 2 * Mt * Cinp * 2        # f32 acc + patch temporaries
    need = 2 * (x_blk + w_blk + s_blk + o_blk) + lhs_blk + tmp + (4 << 20)
    try:
        # 64 MiB/TC on v7x, 128 MiB on v5e/v6e; keep headroom for Mosaic scratch.
        vmem_cap = int(pltpu.get_tpu_info().vmem_capacity_bytes) - (8 << 20)
    except Exception:
        vmem_cap = 112 << 20
    # Never clamp below the actual requirement (previous 60 MB cap could).
    vmem_limit = int(max(min(max(need, 16 << 20), vmem_cap), need))

    cost = pl.CostEstimate(
        flops=2 * N * M * K * Coutp,
        transcendentals=0,
        bytes_accessed=N * x_blk + w_blk + Coutp * 4 + N * M * Coutp * 2)

    out_flat = pl.pallas_call(
        kernel,
        out_shape=jax.ShapeDtypeStruct((N, M, Coutp), jnp.bfloat16),
        grid_spec=pltpu.PrefetchScalarGridSpec(
            num_scalar_prefetch=0,
            grid=(N, n_row_tiles),
            in_specs=[
                # Full s2d image per batch element, resident across row tiles.
                pl.BlockSpec((None, Hg, Wg, Ctot), lambda n, t: (n, 0, 0, 0)),
                pl.BlockSpec((K, Coutp), lambda n, t: (0, 0)),
                pl.BlockSpec((1, Coutp), lambda n, t: (0, 0)),
            ],
            out_specs=pl.BlockSpec((None, Mt, Coutp), lambda n, t: (n, t, 0)),
            scratch_shapes=[pltpu.VMEM((Mt, K), jnp.bfloat16)],
        ),
        compiler_params=pltpu.CompilerParams(
            dimension_semantics=("parallel", "parallel"),
            vmem_limit_bytes=vmem_limit),
        cost_estimate=cost,
    )(x, w_mat, shift_p)

    out = out_flat.reshape(N, H_out, W_out, Coutp)[..., :Cout]       # drop pad
    # NOTE: NCHW round trip kept only for the PyTorch interface (see TODO above).
    return jnp.transpose(out, (0, 3, 1, 2)).astype(x_nchw.dtype)


def _reference(x_nchw, weight, gamma, beta, running_mean, running_var,
               *, stride=1, leaky_slope=0.1, eps=1e-5):
    KH, KW = weight.shape[2], weight.shape[3]
    y = lax.conv_general_dilated(
        x_nchw, weight, window_strides=(stride, stride),
        padding=((KH // 2, KH // 2), (KW // 2, KW // 2)),
        dimension_numbers=("NCHW", "OIHW", "NCHW"))
    scale = (gamma / jnp.sqrt(running_var + eps)).reshape(1, -1, 1, 1)
    shift = (beta - running_mean * gamma / jnp.sqrt(running_var + eps)
             ).reshape(1, -1, 1, 1)
    y = y * scale + shift
    return jnp.where(y >= 0, y, y * leaky_slope)


if __name__ == "__main__":
    key = jax.random.PRNGKey(0)
    k_x, k_w, k_g, k_b, k_m, k_v = jax.random.split(key, 6)

    # module config: Conv2dBatchLeaky(in_channels=4, out_channels=8,
    #                                 kernel_size=3, stride=..., leaky_slope=0.1)
    N, Cin, H, W = 2, 4, 16, 16
    Cout, KH, KW = 8, 3, 3
    slope = 0.1

    x = jax.random.normal(k_x, (N, Cin, H, W), dtype=jnp.float32)
    weight = jax.random.normal(k_w, (Cout, Cin, KH, KW), dtype=jnp.float32) * 0.1
    gamma = 1.0 + 0.1 * jax.random.normal(k_g, (Cout,), dtype=jnp.float32)
    beta = 0.1 * jax.random.normal(k_b, (Cout,), dtype=jnp.float32)
    running_mean = 0.1 * jax.random.normal(k_m, (Cout,), dtype=jnp.float32)
    running_var = jnp.abs(jax.random.normal(k_v, (Cout,), dtype=jnp.float32)) + 0.5

    # stride=1, explicit row_block=8 -> exercises the multi-row-tile grid path.
    out1 = conv2d_batch_leaky(x, weight, gamma, beta, running_mean, running_var,
                              stride=1, leaky_slope=slope, row_block=8)
    out1 = jax.block_until_ready(out1)
    ref1 = _reference(x, weight, gamma, beta, running_mean, running_var,
                      stride=1, leaky_slope=slope)
    assert out1.shape == ref1.shape == (N, Cout, H, W)
    # bf16 MXU operands + bf16 output store (f32 accumulate) -> relaxed tolerance
    assert jnp.allclose(out1, ref1, atol=3e-2, rtol=3e-2)

    # stride=2 -> exercises the space-to-depth path (same kernel code path).
    out2 = conv2d_batch_leaky(x, weight, gamma, beta, running_mean, running_var,
                              stride=2, leaky_slope=slope)
    out2 = jax.block_until_ready(out2)
    ref2 = _reference(x, weight, gamma, beta, running_mean, running_var,
                      stride=2, leaky_slope=slope)
    assert out2.shape == ref2.shape == (N, Cout, H // 2, W // 2)
    assert jnp.allclose(out2, ref2, atol=3e-2, rtol=3e-2)

    print("KERNEL_OK")
</pallas_src>

<mosaic_0001>
module attributes {stable_mosaic.version = 11 : i64} {
  func.func @_conv_bn_leaky_kernel(%arg0: i32, %arg1: i32, %arg2: memref<1x18x18x128xbf16, #tpu.memory_space<vmem>>, %arg3: memref<1152x128xbf16, #tpu.memory_space<vmem>>, %arg4: memref<1x128xf32, #tpu.memory_space<vmem>>, %arg5: memref<1x128x128xbf16, #tpu.memory_space<vmem>>, %arg6: memref<128x1152xbf16, #tpu.memory_space<vmem>>) attributes {dimension_semantics = [#tpu.dimension_semantics<parallel>, #tpu.dimension_semantics<parallel>], iteration_bounds = array<i64: 2, 2>, scalar_prefetch = 0 : i64, scratch_operands = 1 : i64, tpu.core_type = #tpu.core_type<tc>, window_params = [{transform_indices = @transform_0, window_bounds = array<i64: 1, 18, 18, 128>}, {pipeline_mode = #tpu.pipeline_mode<synchronous>, transform_indices = @transform_1, window_bounds = array<i64: 1152, 128>}, {pipeline_mode = #tpu.pipeline_mode<synchronous>, transform_indices = @transform_2, window_bounds = array<i64: 1, 128>}, {transform_indices = @transform_3, window_bounds = array<i64: 1, 128, 128>}]} {
    %c8_i32 = arith.constant 8 : i32
    %0 = arith.muli %arg1, %c8_i32 : i32
    %1 = tpu.assume_multiple %0, 8 : i32
    %c0_i32 = arith.constant 0 : i32
    %2 = arith.addi %1, %c0_i32 : i32
    %c0 = arith.constant 0 : index
    %3 = arith.index_cast %2 : i32 to index
    %c0_0 = arith.constant 0 : index
    %c0_1 = arith.constant 0 : index
    %4 = vector.load %arg2[%c0, %3, %c0_0, %c0_1] : memref<1x18x18x128xbf16, #tpu.memory_space<vmem>>, vector<1x8x16x128xbf16>
    %5 = vector.shape_cast %4 : vector<1x8x16x128xbf16> to vector<8x16x128xbf16>
    %6 = vector.shape_cast %5 : vector<8x16x128xbf16> to vector<128x128xbf16>
    %c0_2 = arith.constant 0 : index
    %c0_3 = arith.constant 0 : index
    %7 = vector.load %arg6[%c0_2, %c0_3] : memref<128x1152xbf16, #tpu.memory_space<vmem>>, vector<128x128xbf16>
    tpu.vector_store %arg6[%c0_2, %c0_3], %6 {strides = array<i32>} : memref<128x1152xbf16, #tpu.memory_space<vmem>>, vector<128x128xbf16>,
    %c0_i32_4 = arith.constant 0 : i32
    %8 = arith.addi %1, %c0_i32_4 : i32
    %c0_5 = arith.constant 0 : index
    %9 = arith.index_cast %8 : i32 to index
    %c1 = arith.constant 1 : index
    %c0_6 = arith.constant 0 : index
    %10 = vector.load %arg2[%c0_5, %9, %c1, %c0_6] : memref<1x18x18x128xbf16, #tpu.memory_space<vmem>>, vector<1x8x16x128xbf16>
    %11 = vector.shape_cast %10 : vector<1x8x16x128xbf16> to vector<8x16x128xbf16>
    %12 = vector.shape_cast %11 : vector<8x16x128xbf16> to vector<128x128xbf16>
    %c0_7 = arith.constant 0 : index
    %c128 = arith.constant 128 : index
    %13 = vector.load %arg6[%c0_7, %c128] : memref<128x1152xbf16, #tpu.memory_space<vmem>>, vector<128x128xbf16>
    tpu.vector_store %arg6[%c0_7, %c128], %12 {strides = array<i32>} : memref<128x1152xbf16, #tpu.memory_space<vmem>>, vector<128x128xbf16>,
    %c0_i32_8 = arith.constant 0 : i32
    %14 = arith.addi %1, %c0_i32_8 : i32
    %c0_9 = arith.constant 0 : index
    %15 = arith.index_cast %14 : i32 to index
    %c2 = arith.constant 2 : index
    %c0_10 = arith.constant 0 : index
    %16 = vector.load %arg2[%c0_9, %15, %c2, %c0_10] : memref<1x18x18x128xbf16, #tpu.memory_space<vmem>>, vector<1x8x16x128xbf16>
    %17 = vector.shape_cast %16 : vector<1x8x16x128xbf16> to vector<8x16x128xbf16>
    %18 = vector.shape_cast %17 : vector<8x16x128xbf16> to vector<128x128xbf16>
    %c0_11 = arith.constant 0 : index
    %c256 = arith.constant 256 : index
    %19 = vector.load %arg6[%c0_11, %c256] : memref<128x1152xbf16, #tpu.memory_space<vmem>>, vector<128x128xbf16>
    tpu.vector_store %arg6[%c0_11, %c256], %18 {strides = array<i32>} : memref<128x1152xbf16, #tpu.memory_space<vmem>>, vector<128x128xbf16>,
    %c1_i32 = arith.constant 1 : i32
    %20 = arith.addi %1, %c1_i32 : i32
    %c0_12 = arith.constant 0 : index
    %21 = arith.index_cast %20 : i32 to index
    %c0_13 = arith.constant 0 : index
    %c0_14 = arith.constant 0 : index
    %22 = vector.load %arg2[%c0_12, %21, %c0_13, %c0_14] : memref<1x18x18x128xbf16, #tpu.memory_space<vmem>>, vector<1x8x16x128xbf16>
    %23 = vector.shape_cast %22 : vector<1x8x16x128xbf16> to vector<8x16x128xbf16>
    %24 = vector.shape_cast %23 : vector<8x16x128xbf16> to vector<128x128xbf16>
    %c0_15 = arith.constant 0 : index
    %c384 = arith.constant 384 : index
    %25 = vector.load %arg6[%c0_15, %c384] : memref<128x1152xbf16, #tpu.memory_space<vmem>>, vector<128x128xbf16>
    tpu.vector_store %arg6[%c0_15, %c384], %24 {strides = array<i32>} : memref<128x1152xbf16, #tpu.memory_space<vmem>>, vector<128x128xbf16>,
    %c1_i32_16 = arith.constant 1 : i32
    %26 = arith.addi %1, %c1_i32_16 : i32
    %c0_17 = arith.constant 0 : index
    %27 = arith.index_cast %26 : i32 to index
    %c1_18 = arith.constant 1 : index
    %c0_19 = arith.constant 0 : index
    %28 = vector.load %arg2[%c0_17, %27, %c1_18, %c0_19] : memref<1x18x18x128xbf16, #tpu.memory_space<vmem>>, vector<1x8x16x128xbf16>
    %29 = vector.shape_cast %28 : vector<1x8x16x128xbf16> to vector<8x16x128xbf16>
    %30 = vector.shape_cast %29 : vector<8x16x128xbf16> to vector<128x128xbf16>
    %c0_20 = arith.constant 0 : index
    %c512 = arith.constant 512 : index
    %31 = vector.load %arg6[%c0_20, %c512] : memref<128x1152xbf16, #tpu.memory_space<vmem>>, vector<128x128xbf16>
    tpu.vector_store %arg6[%c0_20, %c512], %30 {strides = array<i32>} : memref<128x1152xbf16, #tpu.memory_space<vmem>>, vector<128x128xbf16>,
    %c1_i32_21 = arith.constant 1 : i32
    %32 = arith.addi %1, %c1_i32_21 : i32
    %c0_22 = arith.constant 0 : index
    %33 = arith.index_cast %32 : i32 to index
    %c2_23 = arith.constant 2 : index
    %c0_24 = arith.constant 0 : index
    %34 = vector.load %arg2[%c0_22, %33, %c2_23, %c0_24] : memref<1x18x18x128xbf16, #tpu.memory_space<vmem>>, vector<1x8x16x128xbf16>
    %35 = vector.shape_cast %34 : vector<1x8x16x128xbf16> to vector<8x16x128xbf16>
    %36 = vector.shape_cast %35 : vector<8x16x128xbf16> to vector<128x128xbf16>
    %c0_25 = arith.constant 0 : index
    %c640 = arith.constant 640 : index
    %37 = vector.load %arg6[%c0_25, %c640] : memref<128x1152xbf16, #tpu.memory_space<vmem>>, vector<128x128xbf16>
    tpu.vector_store %arg6[%c0_25, %c640], %36 {strides = array<i32>} : memref<128x1152xbf16, #tpu.memory_space<vmem>>, vector<128x128xbf16>,
    %c2_i32 = arith.constant 2 : i32
    %38 = arith.addi %1, %c2_i32 : i32
    %c0_26 = arith.constant 0 : index
    %39 = arith.index_cast %38 : i32 to index
    %c0_27 = arith.constant 0 : index
    %c0_28 = arith.constant 0 : index
    %40 = vector.load %arg2[%c0_26, %39, %c0_27, %c0_28] : memref<1x18x18x128xbf16, #tpu.memory_space<vmem>>, vector<1x8x16x128xbf16>
    %41 = vector.shape_cast %40 : vector<1x8x16x128xbf16> to vector<8x16x128xbf16>
    %42 = vector.shape_cast %41 : vector<8x16x128xbf16> to vector<128x128xbf16>
    %c0_29 = arith.constant 0 : index
    %c768 = arith.constant 768 : index
    %43 = vector.load %arg6[%c0_29, %c768] : memref<128x1152xbf16, #tpu.memory_space<vmem>>, vector<128x128xbf16>
    tpu.vector_store %arg6[%c0_29, %c768], %42 {strides = array<i32>} : memref<128x1152xbf16, #tpu.memory_space<vmem>>, vector<128x128xbf16>,
    %c2_i32_30 = arith.constant 2 : i32
    %44 = arith.addi %1, %c2_i32_30 : i32
    %c0_31 = arith.constant 0 : index
    %45 = arith.index_cast %44 : i32 to index
    %c1_32 = arith.constant 1 : index
    %c0_33 = arith.constant 0 : index
    %46 = vector.load %arg2[%c0_31, %45, %c1_32, %c0_33] : memref<1x18x18x128xbf16, #tpu.memory_space<vmem>>, vector<1x8x16x128xbf16>
    %47 = vector.shape_cast %46 : vector<1x8x16x128xbf16> to vector<8x16x128xbf16>
    %48 = vector.shape_cast %47 : vector<8x16x128xbf16> to vector<128x128xbf16>
    %c0_34 = arith.constant 0 : index
    %c896 = arith.constant 896 : index
    %49 = vector.load %arg6[%c0_34, %c896] : memref<128x1152xbf16, #tpu.memory_space<vmem>>, vector<128x128xbf16>
    tpu.vector_store %arg6[%c0_34, %c896], %48 {strides = array<i32>} : memref<128x1152xbf16, #tpu.memory_space<vmem>>, vector<128x128xbf16>,
    %c2_i32_35 = arith.constant 2 : i32
    %50 = arith.addi %1, %c2_i32_35 : i32
    %c0_36 = arith.constant 0 : index
    %51 = arith.index_cast %50 : i32 to index
    %c2_37 = arith.constant 2 : index
    %c0_38 = arith.constant 0 : index
    %52 = vector.load %arg2[%c0_36, %51, %c2_37, %c0_38] : memref<1x18x18x128xbf16, #tpu.memory_space<vmem>>, vector<1x8x16x128xbf16>
    %53 = vector.shape_cast %52 : vector<1x8x16x128xbf16> to vector<8x16x128xbf16>
    %54 = vector.shape_cast %53 : vector<8x16x128xbf16> to vector<128x128xbf16>
    %c0_39 = arith.constant 0 : index
    %c1024 = arith.constant 1024 : index
    %55 = vector.load %arg6[%c0_39, %c1024] : memref<128x1152xbf16, #tpu.memory_space<vmem>>, vector<128x128xbf16>
    tpu.vector_store %arg6[%c0_39, %c1024], %54 {strides = array<i32>} : memref<128x1152xbf16, #tpu.memory_space<vmem>>, vector<128x128xbf16>,
    %c0_40 = arith.constant 0 : index
    %c0_41 = arith.constant 0 : index
    %56 = vector.load %arg6[%c0_40, %c0_41] : memref<128x1152xbf16, #tpu.memory_space<vmem>>, vector<128x1152xbf16>
    %c0_42 = arith.constant 0 : index
    %c0_43 = arith.constant 0 : index
    %57 = vector.load %arg3[%c0_42, %c0_43] : memref<1152x128xbf16, #tpu.memory_space<vmem>>, vector<1152x128xbf16>
    %cst = arith.constant dense<0.000000e+00> : vector<128x128xf32>
    %58 = tpu.matmul %56, %57, %cst {dimension_numbers = #tpu.dot_dimension_numbers<[1], [0], [0], [1], [0, 0, 1, 1], [], []>} : vector<128x1152xbf16>, vector<1152x128xbf16>, vector<128x128xf32> -> vector<128x128xf32>
    %c0_44 = arith.constant 0 : index
    %c0_45 = arith.constant 0 : index
    %59 = vector.load %arg4[%c0_44, %c0_45] : memref<1x128xf32, #tpu.memory_space<vmem>>, vector<1x128xf32>
    %60 = vector.broadcast %59 : vector<1x128xf32> to vector<128x128xf32>
    %61 = arith.addf %58, %60 : vector<128x128xf32>
    %cst_46 = arith.constant 1.000000e-01 : f32
    %62 = vector.broadcast %cst_46 : f32 to vector<128x128xf32>
    %63 = arith.mulf %61, %62 : vector<128x128xf32>
    %64 = arith.maximumf %61, %63 : vector<128x128xf32>
    %65 = arith.truncf %64 : vector<128x128xf32> to vector<128x128xbf16>
    %c0_47 = arith.constant 0 : index
    %c0_48 = arith.constant 0 : index
    %c0_49 = arith.constant 0 : index
    %66 = vector.load %arg5[%c0_47, %c0_48, %c0_49] : memref<1x128x128xbf16, #tpu.memory_space<vmem>>, vector<1x128x128xbf16>
    %67 = vector.shape_cast %66 : vector<1x128x128xbf16> to vector<128x128xbf16>
    %68 = vector.shape_cast %65 : vector<128x128xbf16> to vector<1x128x128xbf16>
    tpu.vector_store %arg5[%c0_47, %c0_48, %c0_49], %68 {strides = array<i32>} : memref<1x128x128xbf16, #tpu.memory_space<vmem>>, vector<1x128x128xbf16>,
    return
  }
  func.func @transform_0(%arg0: i32, %arg1: i32) -> (i32, i32, i32, i32) {
    %c0_i32 = arith.constant 0 : i32
    %c0_i32_0 = arith.constant 0 : i32
    %c0_i32_1 = arith.constant 0 : i32
    %c0_i32_2 = arith.constant 0 : i32
    return %arg0, %c0_i32, %c0_i32_0, %c0_i32_1 : i32, i32, i32, i32
  }
  func.func @transform_1(%arg0: i32, %arg1: i32) -> (i32, i32) {
    %c0_i32 = arith.constant 0 : i32
    %c0_i32_0 = arith.constant 0 : i32
    %c0_i32_1 = arith.constant 0 : i32
    return %c0_i32, %c0_i32_0 : i32, i32
  }
  func.func @transform_2(%arg0: i32, %arg1: i32) -> (i32, i32) {
    %c0_i32 = arith.constant 0 : i32
    %c0_i32_0 = arith.constant 0 : i32
    %c0_i32_1 = arith.constant 0 : i32
    return %c0_i32, %c0_i32_0 : i32, i32
  }
  func.func @transform_3(%arg0: i32, %arg1: i32) -> (i32, i32, i32) {
    %c0_i32 = arith.constant 0 : i32
    %c0_i32_0 = arith.constant 0 : i32
    return %arg0, %arg1, %c0_i32 : i32, i32, i32
  }
}

</mosaic_0001>

<bundles_post_ra>
// kernel: tpu_custom_call.1
= control target key start
LH: loop header
LB: loop body
LE: loop exit
PB: predicated region body
PF: predicated region fallthrough
CT: control target
= control target key end

     0   :  { %8 = vsyncpa [#allocation4], 0  ;;  %s4849_s0 = inlined_call_operand.vmem [shape: bf16[2,18,18,128], index: 0, kind: input, shape index: {}]   ;;  %s4850_s1 = inlined_call_operand.vmem [shape: bf16[1152,128], index: 1, kind: input, shape index: {}]   ;;  %s4851_s2 = inlined_call_operand.vmem [shape: f32[1,128], index: 2, kind: input, shape index: {}]   ;;  %s4852_s3 = inlined_call_operand.hbm [shape: bf16[2,256,128], index: 3, kind: output, shape index: {}]  }
   0x1   :  { %10 = vsyncpa [#allocation4 + $0x1], 0  ;;  %s3979_s12 = smov 0   ;;  %s3981_s13 = smov 0  }
   0x2   :  { %s3983_s14 = smov 0   ;;  %s3985_s15 = smov 0  }
   0x3   :  { %s3987_s16 = smov 0   ;;  %s3989_s17 = smov 0  }
   0x4   :  { %s3991_s18 = smov 0   ;;  %s3993_s19 = smov 0  }
   0x5 LB: > { %s2973_s20 = sadd.s32 4294967295, %s3954_s19   ;;  %s2974_s21 = sadd.s32 4294967294, %s3954_s19   ;;  %s3954_s19 = sphi %s3993_s19, %s16_s19   ;;  %s3950_s18 = sphi %s3991_s18, %s4865_s18   ;;  %s3946_s17 = sphi %s3989_s17, %s4864_s17   ;;  %s3942_s16 = sphi %s3987_s16, %s4863_s16   ;;  %s3938_s15 = sphi %s3985_s15, %s4862_s15   ;;  %s3934_s14 = sphi %s3983_s14, %s4861_s14   ;;  %s3930_s13 = sphi %s3981_s13, %s4860_s13   ;;  %s3926_s12 = sphi %s3979_s12, %s4859_s12  }
   0x6   : > { %s25_s22 = sadd.s32 1, %s3946_s17  ;;  %s28_s23 = sadd.s32 1, %s3950_s18 }
   0x7   : > { %p26_p0 = scmp.ge.s32.totalorder %s25_s22, 2  ;;  %p115_p1 = scmp.ne.s32.totalorder %s3934_s14, %s3930_s13 }
   0x8   : > { %p116_p2 = scmp.eq.s32.totalorder %s2973_s20, 3  ;;  %p121_p5 = scmp.ne.s32.totalorder %s3930_s13, %s3926_s12 }
   0x9   : > { %s4867_s22 = smov (%p26_p0, %s25_s22), 0  ;;  %s4869_s23 = smov (!%p26_p0, %s28_s23), %s3950_s18 }
   0xa   : > { %s101_s24 = ssub.s32 %s3946_s17, %s4867_s22  ;;  %p4030_p3 = por %p116_p2, %p115_p1 }
   0xb   : > { %p30_p4 = scmp.ge.s32.totalorder %s4869_s23, 2  ;;  %p122_p6 = scmp.eq.s32.totalorder %s2974_s21, 3 }
   0xc   : > { %p2977_p7 = scmp.ge.s32.totalorder %s3954_s19, 1  ;;  %p154_p9 = scmp.lt.s32.totalorder %s3954_s19, 5 }
   0xd   : > { %s4871_s23 = smov (%p30_p4, %s4869_s23), 0  ;;  %p4039_p8 = por %p122_p6, %p121_p5 }
   0xe   : > { %s100_s27 = ssub.s32 %s3950_s18, %s4871_s23  ;;  %s105_s28 = sadd.s32 1, %s3934_s14 }
   0xf   : > { %s102_s29 = sor.u32 %s101_s24, %s100_s27  ;;  %p155_p10 = pnand %p2977_p7, %p154_p9 }
  0x10   : > { %p103_p11 = scmp.eq.s32.totalorder %s102_s29, 0  ;;  %v3764_v0 = vld [vmem:[%s4850_s1 + $0x40] sm:$0xff] (!%p155_p10)   ;;  %v3768_v4 = vld [vmem:[%s4850_s1 + $0x48] sm:$0xff] (!%p155_p10)   ;;  %v3772_v8 = vld [vmem:[%s4850_s1 + $0x50] sm:$0xff] (!%p155_p10)   ;;  %p178_p12 = scmp.lt.s32.totalorder (!%p155_p10), %s3942_s16, 1  ;;  %vm568_vm0 = vcmask (!%p155_p10), 1042432  }
  0x11   : > { %158 = sbr.rel (%p155_p10) target bundleno = 432 (0x1b0), region = 32  ;;  %v3765_v1 = vld [vmem:[%s4850_s1 + $0xc0] sm:$0xff] (!%p155_p10)   ;;  %3370 = vmatprep.subr.bf16.mxu0 (!%p155_p10), %v3764_v0  ;;  %v3769_v5 = vld [vmem:[%s4850_s1 + $0xc8] sm:$0xff] (!%p155_p10)   ;;  %v3773_v9 = vld [vmem:[%s4850_s1 + $0xd0] sm:$0xff] (!%p155_p10)   ;;  %vm569_vm1 = vcmask (!%p155_p10), 1046532   ;;  %s175_s8 = sand.u32 (!%p155_p10), 1, %s3930_s13  }
  0x12   : > { %s4048_s30 = scalar_select %p103_p11, %s3934_s14, %s105_s28  }
  0x13   : > { %v3766_v2 = vld [vmem:[%s4850_s1] sm:$0xff] (!%p155_p10)   ;;  %3434 = vmatprep.subr.bf16.mxu1 (!%p155_p10), %v3765_v1  ;;  %v3770_v6 = vld [vmem:[%s4850_s1 + $0x8] sm:$0xff] (!%p155_p10)   ;;  %v3774_v10 = vld [vmem:[%s4850_s1 + $0x10] sm:$0xff] (!%p155_p10)   ;;  %s3306_s29 = smul.u32 (!%p155_p10), 96, %s3938_s15  ;;  %vm285_vm2 = vsmask.f32 (!%p155_p10), 3328 }
  0x14   : > { %v3767_v3 = vld [vmem:[%s4850_s1 + $0x80] sm:$0xff] (!%p155_p10)   ;;  %3371 = vmatpush3.bf16.msra.mxu0 (!%p155_p10), %v3766_v2  ;;  %v3771_v7 = vld [vmem:[%s4850_s1 + $0x88] sm:$0xff] (!%p155_p10)   ;;  %v3775_v11 = vld [vmem:[%s4850_s1 + $0x90] sm:$0xff] (!%p155_p10)   ;;  %vm286_vm3 = vsmask.f32 (!%p155_p10), 7440  ;;  %s2978_s10 = sshll.u32 (!%p155_p10), %s175_s8, 6 }
  0x15   : > { %3435 = vmatpush3.bf16.msra.mxu1 (!%p155_p10), %v3767_v3  ;;  %3372 = vmatprep.subr.bf16.mxu0 (!%p155_p10), %v3768_v4  ;;  %v3776_v12 = vld [vmem:[%s4850_s1 + $0x58] sm:$0xff] (!%p155_p10)   ;;  %v3780_v16 = vld [vmem:[%s4850_s1 + $0x60] sm:$0xff] (!%p155_p10)   ;;  %v3784_v20 = vld [vmem:[%s4850_s1 + $0x68] sm:$0xff] (!%p155_p10)   ;;  %s4770_s11 = scalar_lea.vmem (!%p155_p10), [#allocation3], %s2978_s10  ;;  %s3301_s20 = sshll.u32 (!%p155_p10), %s3938_s15, 4 }
  0x16   : > { %3436 = vmatprep.subr.bf16.mxu1 (!%p155_p10), %v3769_v5  ;;  %v3777_v13 = vld [vmem:[%s4850_s1 + $0xd8] sm:$0xff] (!%p155_p10)   ;;  %v3781_v17 = vld [vmem:[%s4850_s1 + $0xe0] sm:$0xff] (!%p155_p10)   ;;  %v3785_v21 = vld [vmem:[%s4850_s1 + $0xe8] sm:$0xff] (!%p155_p10)   ;;  %s3302_s21 = sshll.u32 (!%p155_p10), %s3942_s16, 5  ;;  %s2887_s27 = sshll.u32 (!%p155_p10), %s4770_s11, 4  ;;  %s4791_s27 = int_to_ptr.vmem [resolvable:$true] %s2887_s27 }
  0x17   : > { %v3778_v14 = vld [vmem:[%s4850_s1 + $0x18] sm:$0xff] (!%p155_p10)   ;;  %v3782_v18 = vld [vmem:[%s4850_s1 + $0x20] sm:$0xff] (!%p155_p10)   ;;  %v3786_v22 = vld [vmem:[%s4850_s1 + $0x28] sm:$0xff] (!%p155_p10)   ;;  %s2884_s15 = sadd.s32 (!%p155_p10), %s3302_s21, %s3301_s20  ;;  %s3956_s6 = smov (!%p155_p10), [#allocation3]  }
  0x18   : > { %3373 = vmatpush3.bf16.msra.mxu0 %v3770_v6  ;;  %v3779_v15 = vld [vmem:[%s4850_s1 + $0x98] sm:$0xff]   ;;  %s179_s24 = scalar_select %p178_p12, %s3942_s16, 1  ;;  %v3783_v19 = vld [vmem:[%s4850_s1 + $0xa0] sm:$0xff]   ;;  %v3787_v23 = vld [vmem:[%s4850_s1 + $0xa8] sm:$0xff]  }
  0x19   : > { %3437 = vmatpush3.bf16.msra.mxu1 %v3771_v7  ;;  %3374 = vmatprep.subr.bf16.mxu0 %v3772_v8  ;;  %v3788_v24 = vld [vmem:[%s4850_s1 + $0x70] sm:$0xff]   ;;  %v3792_v28 = vld [vmem:[%s4850_s1 + $0x78] sm:$0xff]   ;;  %vm4160_vm4 = vmor %vm568_vm0, %vm569_vm1  ;;  %s3303_s16 = sshll.u32 %s2884_s15, 6 }
  0x1a   : > { %3438 = vmatprep.subr.bf16.mxu1 %v3773_v9  ;;  %s3690_s9 = smul.u32 216, %s179_s24  ;;  %v3789_v25 = vld [vmem:[%s4850_s1 + $0xf0] sm:$0xff]   ;;  %v3793_v29 = vld [vmem:[%s4850_s1 + $0xf8] sm:$0xff]   ;;  %vm4169_vm5 = vmor %vm285_vm2, %vm286_vm3  ;;  %s4789_s5 = scalar_lea.hbm %s4852_s3, %s3303_s16 }
  0x1b   : > { %v3790_v26 = vld [vmem:[%s4850_s1 + $0x30] sm:$0xff]   ;;  %v3794_v30 = vld [vmem:[%s4850_s1 + $0x38] sm:$0xff]   ;;  %v3798_v56 = vld [vmem:[%s4850_s1 + $0x140] sm:$0xff]   ;;  %s4797_s24 = scalar_lea.sflag [#allocation4], %s175_s8 }
  0x1c   : > { %3375 = vmatpush3.bf16.msra.mxu0 %v3774_v10  ;;  %s182_s7 = scalar_lea.vmem %s4849_s0, %s3690_s9  ;;  %v3791_v27 = vld [vmem:[%s4850_s1 + $0xb0] sm:$0xff]   ;;  %v3795_v31 = vld [vmem:[%s4850_s1 + $0xb8] sm:$0xff]   ;;  %v3799_v58 = vld [vmem:[%s4850_s1 + $0x1c0] sm:$0xff]  }
  0x1d   : > { %3439 = vmatpush3.bf16.msra.mxu1 %v3775_v11  ;;  %3376 = vmatprep.subr.bf16.mxu0 %v3776_v12  ;;  %s4146_s28 = scalar_lea.vmem %s182_s7, %s3306_s29  ;;  %v3800_v0 = vld [vmem:[%s4850_s1 + $0x100] sm:$0xff]   ;;  %s3860_s29 = scalar_lea.vmem %s4791_s27, 1024 }
  0x1e   : > { %3440 = vmatprep.subr.bf16.mxu1 %v3777_v13  ;;  %v261_v32 = vld [vmem:[%s4146_s28] sm:$0xf]  ;;  %v262_v33 = vld [vmem:[%s4146_s28 + $0x4] sm:$0xf]  ;;  %v263_v34 = vld [vmem:[%s4146_s28 + $0x8] sm:$0x1]  ;;  %p3861_p13 = scmp.ne.s32.totalorder %s4791_s27, %s3860_s29 }
  0x1f   : > { %v289_v35 = vshrl.u32 %v261_v32, 16  ;;  %v292_v36 = vshll.u32 %v261_v32, 16  ;;  %v298_v37 = vshll.u32 %v262_v33, 16  ;;  %v302_v38 = vshrl.u32 %v262_v33, 16  ;;  %v3796_v40 = vld [vmem:[%s4146_s28 + $0xc] sm:$0xff]   ;;  %v3797_v60 = vld [vmem:[%s4146_s28] sm:$0xff]  }
  0x20   : > { %3377 = vmatpush3.bf16.msra.mxu0 %v3778_v14  ;;  %v308_v39 = vshll.u32 %v263_v34, 16  ;;  %2403 = vmatprep.mubr.bf16.mxu1 %v3796_v40  ;;  %v520_v48 = vld [vmem:[%s4146_s28] sm:$0xe]  ;;  %v521_v49 = vld [vmem:[%s4146_s28 + $0x4] sm:$0xf]  ;;  %v3802_v14 = vld [vmem:[%s4146_s28 + $0x18] sm:$0xff]   ;;  %p3862_p0 = pnand %p3861_p13, %p4030_p3 }
  0x21   : > { %3441 = vmatpush3.bf16.msra.mxu1 %v3779_v15  ;;  %3378 = vmatprep.subr.bf16.mxu0 %v3780_v16  ;;  %v291_v41 = vrot.slane %v289_v35, 4  ;;  %v294_v42 = vrot.slane %v292_v36, 5  ;;  %v300_v43 = vrot.slane %v298_v37, 5  ;;  %v304_v44 = vrot.slane %v302_v38, 4  ;;  %v522_v50 = vld [vmem:[%s4146_s28 + $0x8] sm:$0x1] }
  0x22   : > { %3442 = vmatprep.subr.bf16.mxu1 %v3781_v17  ;;  %v310_v45 = vrot.slane %v308_v39, 5  ;;  %v2999_v53 = vrot.slane %v520_v48, 9  ;;  %v573_v54 = vrot.slane %v521_v49, 5  ;;  %v576_v55 = vrot.slane %v522_v50, 5  ;;  %v3801_v3 = vld [vmem:[%s4850_s1 + $0x180] sm:$0xff]   ;;  %v3803_v32 = vld [vmem:[%s4146_s28 + $0xc] sm:$0xff]   ;;  %p3863_p1 = pneg %p3862_p0 }
  0x23   : > { %v295_v47 = vor.u32 %v294_v42, %v291_v41  ;;  %v305_v52 = vor.u32 %v304_v44, %v300_v43  ;;  %v264_v4 = vld [vmem:[%s4146_s28 + $0xc] sm:$0xf]  ;;  %v265_v7 = vld [vmem:[%s4146_s28 + $0x10] sm:$0xf]  ;;  %v266_v8 = vld [vmem:[%s4146_s28 + $0x14] sm:$0x1] }
  0x24   : > { %3379 = vmatpush3.bf16.msra.mxu0 %v3782_v18  ;;  %v574_v61 = vsel %vm4160_vm4, %v2999_v53, %v573_v54  ;;  %v575_v62 = vrot.slane %v573_v54, 4  ;;  %v313_v9 = vshrl.u32 %v264_v4, 16  ;;  %v316_v10 = vshll.u32 %v264_v4, 16  ;;  %v3806_v36 = vld [vmem:[%s4850_s1 + $0x108] sm:$0xff]   ;;  %v267_v40 = vld [vmem:[%s4146_s28 + $0x18] sm:$0xf] }
  0x25   : > { %3443 = vmatpush3.bf16.msra.mxu1 %v3783_v19  ;;  %3380 = vmatprep.subr.bf16.mxu0 %v3784_v20  ;;  %v296_v57 = vrot.slane %v295_v47, 4  ;;  %v306_v59 = vrot.slane %v305_v52, 4  ;;  %v322_v11 = vshll.u32 %v265_v7, 16  ;;  %v326_v12 = vshrl.u32 %v265_v7, 16  ;;  %v3807_v39 = vld [vmem:[%s4850_s1 + $0x188] sm:$0xff]   ;;  %v3811_v4 = vld [vmem:[%s4850_s1 + $0x1d0] sm:$0xff]  }
  0x26   : > { %3444 = vmatprep.subr.bf16.mxu1 %v3785_v21  ;;  %v577_v2 = vsel %vm4160_vm4, %v575_v62, %v576_v55  ;;  %v332_v13 = vshll.u32 %v266_v8, 16  ;;  %v315_v15 = vrot.slane %v313_v9, 4  ;;  %v318_v16 = vrot.slane %v316_v10, 5  ;;  %v523_v21 = vld [vmem:[%s4146_s28 + $0xc] sm:$0xe]  ;;  %v3808_v52 = vld [vmem:[%s4146_s28 + $0x24] sm:$0xff]  }
  0x27   : > { %v301_v63 = vsel %vm4169_vm5, %v296_v57, %v300_v43  ;;  %v311_v1 = vsel %vm4169_vm5, %v306_v59, %v310_v45  ;;  %v3007_v6 = vcombine.low %v574_v61, %v577_v2  ;;  %v324_v17 = vrot.slane %v322_v11, 5  ;;  %v268_v43 = vld [vmem:[%s4146_s28 + $0x1c] sm:$0xf]  ;;  %v269_v44 = vld [vmem:[%s4146_s28 + $0x20] sm:$0x1]  ;;  %v3810_v2 = vld [vmem:[%s4850_s1 + $0x150] sm:$0xff]  }
  0x28   : > { %3381 = vmatpush3.bf16.msra.mxu0 %v3786_v22  ;;  %v2991_v5 = vcombine.low %v301_v63, %v311_v1  ;;  %v328_v18 = vrot.slane %v326_v12, 4  ;;  %v334_v19 = vrot.slane %v332_v13, 5  ;;  %v319_v20 = vor.u32 %v318_v16, %v315_v15  ;;  %v524_v22 = vld [vmem:[%s4146_s28 + $0x10] sm:$0xf]  ;;  %v526_v59 = vld [vmem:[%s4146_s28 + $0x18] sm:$0xe] }
  0x29   : > { %3445 = vmatpush3.bf16.msra.mxu1 %v3787_v23  ;;  %3382 = vmatprep.subr.bf16.mxu0 %v3788_v24  ;;  %v525_v23 = vld [vmem:[%s4146_s28 + $0x14] sm:$0x1]  ;;  %v337_v45 = vshrl.u32 %v267_v40, 16  ;;  %v340_v47 = vshll.u32 %v267_v40, 16  ;;  %v346_v48 = vshll.u32 %v268_v43, 16  ;;  %v350_v49 = vshrl.u32 %v268_v43, 16 }
  0x2a   : > { %3446 = vmatprep.subr.bf16.mxu1 %v3789_v25  ;;  %2306 = vmatprep.mubr.bf16.mxu0 %v2991_v5  ;;  %v329_v24 = vor.u32 %v328_v18, %v324_v17  ;;  %v3000_v25 = vrot.slane %v523_v21, 9  ;;  %v356_v50 = vshll.u32 %v269_v44, 16  ;;  %v528_v61 = vld [vmem:[%s4146_s28 + $0x20] sm:$0x1]  ;;  %v3001_v63 = vrot.slane %v526_v59, 9  ;;  %v3812_v10 = vld [vmem:[%s4850_s1 + $0x110] sm:$0xff]  }
  0x2b   : > { %v339_v53 = vrot.slane %v337_v45, 4  ;;  %v342_v54 = vrot.slane %v340_v47, 5  ;;  %v348_v55 = vrot.slane %v346_v48, 5  ;;  %v590_v1 = vrot.slane %v528_v61, 5  ;;  %v3813_v13 = vld [vmem:[%s4850_s1 + $0x190] sm:$0xff]   ;;  %v3817_v40 = vld [vmem:[%s4850_s1 + $0x1d8] sm:$0xff]  }
  0x2c   : > { %3383 = vmatpush3.bf16.msra.mxu0 %v3790_v26  ;;  %v580_v26 = vrot.slane %v524_v22, 5  ;;  %v358_v57 = vrot.slane %v356_v50, 5  ;;  %v272_v18 = vld [vmem:[%s4146_s28 + $0x2c] sm:$0x1]  ;;  %v3818_v47 = vld [vmem:[%s4850_s1 + $0x118] sm:$0xff]  }
  0x2d   : > { %3447 = vmatpush3.bf16.msra.mxu1 %v3791_v27  ;;  %3384 = vmatprep.subr.bf16.mxu0 %v3792_v28  ;;  %v583_v27 = vrot.slane %v525_v23, 5  ;;  %v3804_v28 = vld [vmem:[%s4850_s1 + $0x148] sm:$0xff]   ;;  %v380_v23 = vshll.u32 %v272_v18, 16  ;;  %v3819_v50 = vld [vmem:[%s4850_s1 + $0x198] sm:$0xff]  }
  0x2e   : > { %3448 = vmatprep.subr.bf16.mxu1 %v3793_v29  ;;  %v320_v29 = vrot.slane %v319_v20, 4  ;;  %v581_v33 = vsel %vm4160_vm4, %v3000_v25, %v580_v26  ;;  %v582_v34 = vrot.slane %v580_v26, 4  ;;  %v3191_v51 = vld [vmem:[%s4146_s28 + $0x68] sm:$0x1] }
  0x30   : > { %3385 = vmatpush3.bf16.msra.mxu0 %v3794_v30  ;;  %v3805_v30 = vld [vmem:[%s4850_s1 + $0x1c8] sm:$0xff]   ;;  %v325_v35 = vsel %vm4169_vm5, %v320_v29, %v324_v17  ;;  %v584_v38 = vsel %vm4160_vm4, %v582_v34, %v583_v27  ;;  %v382_v29 = vrot.slane %v380_v23, 5  ;;  %v3825_v23 = vld [vmem:[%s4850_s1 + $0x1a0] sm:$0xff]  }
  0x31   : > { %3449 = vmatpush3.bf16.msra.mxu1 %v3795_v31  ;;  %3498 = vmatprep.subr.bf16.mxu0 %v3798_v56  ;;  %v330_v31 = vrot.slane %v329_v24, 4  ;;  %v3008_v42 = vcombine.low %v581_v33, %v584_v38  ;;  %v352_v56 = vrot.slane %v350_v49, 4  ;;  %v271_v17 = vld [vmem:[%s4146_s28 + $0x28] sm:$0xf]  ;;  %v3814_v24 = vld [vmem:[%s4146_s28 + $0x30] sm:$0xff]   ;;  %v3816_v38 = vld [vmem:[%s4850_s1 + $0x158] sm:$0xff]  }
  0x32   : > { %3562 = vmatprep.subr.bf16.mxu1 %v3799_v58  ;;  %v343_v58 = vor.u32 %v342_v54, %v339_v53  ;;  %v370_v21 = vshll.u32 %v271_v17, 16  ;;  %v374_v22 = vshrl.u32 %v271_v17, 16  ;;  %v531_v33 = vld [vmem:[%s4146_s28 + $0x2c] sm:$0x1] }
  0x33   : > { %2307 = vmatmul.mubr.bf16.vlgmr.msra.gmra.mrb[0].mxu0 %v3797_v60  ;;  %v335_v37 = vsel %vm4169_vm5, %v330_v31, %v334_v19  ;;  %v527_v60 = vld [vmem:[%s4146_s28 + $0x1c] sm:$0xf]  ;;  %v353_v62 = vor.u32 %v352_v56, %v348_v55  ;;  %v529_v31 = vld [vmem:[%s4146_s28 + $0x24] sm:$0xe]  ;;  %v275_v56 = vld [vmem:[%s4146_s28 + $0x38] sm:$0x1] }
  0x34   : > { %2404 = vmatmul.mubr.bf16.vlgmr.msra.gmra.mrb[0].mxu1 %v3007_v6  ;;  %3499 = vmatpush3.bf16.msra.mxu0 %v3800_v0  ;;  %v2992_v41 = vcombine.low %v325_v35, %v335_v37  ;;  %v587_v0 = vrot.slane %v527_v60, 5  ;;  %v3809_v6 = vld [vmem:[%s4146_s28 + $0x18] sm:$0xff]   ;;  %v372_v27 = vrot.slane %v370_v21, 5  ;;  %v3002_v35 = vrot.slane %v529_v31, 9 }
  0x35   : > { %3563 = vmatpush3.bf16.msra.mxu1 %v3801_v3  ;;  %2411 = vmatprep.mubr.bf16.mxu1 %v3802_v14  ;;  %v344_v3 = vrot.slane %v343_v58, 4  ;;  %v354_v5 = vrot.slane %v353_v62, 4  ;;  %v270_v14 = vld [vmem:[%s4146_s28 + $0x24] sm:$0xf]  ;;  %v597_v37 = vrot.slane %v531_v33, 5  ;;  %v404_v61 = vshll.u32 %v275_v56, 16 }
  0x36   : > { %3500 = vmatprep.subr.bf16.mxu0 %v3804_v28  ;;  %3564 = vmatprep.subr.bf16.mxu1 %v3805_v30  ;;  %v588_v7 = vsel %vm4160_vm4, %v3001_v63, %v587_v0  ;;  %v589_v8 = vrot.slane %v587_v0, 4  ;;  %v361_v19 = vshrl.u32 %v270_v14, 16  ;;  %v364_v20 = vshll.u32 %v270_v14, 16  ;;  %v3820_v62 = vld [vmem:[%s4146_s28 + $0x3c] sm:$0xff]  }
  0x37   : > { %2314 = vmatprep.mubr.bf16.mxu0 %v2992_v41  ;;  %v349_v9 = vsel %vm4169_vm5, %v344_v3, %v348_v55  ;;  %v359_v11 = vsel %vm4169_vm5, %v354_v5, %v358_v57  ;;  %v376_v28 = vrot.slane %v374_v22, 4  ;;  %v274_v55 = vld [vmem:[%s4146_s28 + $0x34] sm:$0xf]  ;;  %v406_v3 = vrot.slane %v404_v61, 5  ;;  %v532_v5 = vld [vmem:[%s4146_s28 + $0x30] sm:$0xe] }
  0x38   : > { %3501 = vmatpush3.bf16.msra.mxu0 %v3806_v36  ;;  %v591_v12 = vsel %vm4160_vm4, %v589_v8, %v590_v1  ;;  %v2993_v15 = vcombine.low %v349_v9, %v359_v11  ;;  %v363_v25 = vrot.slane %v361_v19, 4  ;;  %v366_v26 = vrot.slane %v364_v20, 5  ;;  %v3823_v14 = vld [vmem:[%s4850_s1 + $0x1e0] sm:$0xff]   ;;  %v3831_v61 = vld [vmem:[%s4850_s1 + $0x1a8] sm:$0xff]  }
  0x39   : > { %3565 = vmatpush3.bf16.msra.mxu1 %v3807_v39  ;;  %3502 = vmatprep.subr.bf16.mxu0 %v3810_v2  ;;  %v3009_v16 = vcombine.low %v588_v7, %v591_v12  ;;  %v377_v34 = vor.u32 %v376_v28, %v372_v27  ;;  %v394_v59 = vshll.u32 %v274_v55, 16  ;;  %v398_v60 = vshrl.u32 %v274_v55, 16  ;;  %v534_v7 = vld [vmem:[%s4146_s28 + $0x38] sm:$0x1]  ;;  %v3822_v12 = vld [vmem:[%s4850_s1 + $0x160] sm:$0xff]  }
  0x3a   : > { %3566 = vmatprep.subr.bf16.mxu1 %v3811_v4  ;;  %v367_v30 = vor.u32 %v366_v26, %v363_v25  ;;  %v3003_v9 = vrot.slane %v532_v5, 9  ;;  %v604_v11 = vrot.slane %v534_v7, 5  ;;  %v3824_v20 = vld [vmem:[%s4850_s1 + $0x120] sm:$0xff]  }
  0x3b   : > { %2315 = vmatmul.mubr.bf16.gmra.mrb[4].mxu0 %v3803_v32  ;;  %v530_v32 = vld [vmem:[%s4146_s28 + $0x28] sm:$0xf]  ;;  %v378_v41 = vrot.slane %v377_v34, 4  ;;  %v396_v1 = vrot.slane %v394_v59, 5  ;;  %v400_v2 = vrot.slane %v398_v60, 4 }
  0x3c   : > { %2412 = vmatmul.mubr.bf16.gmra.mrb[4].mxu1 %v3008_v42  ;;  %3503 = vmatpush3.bf16.msra.mxu0 %v3812_v10  ;;  %v594_v36 = vrot.slane %v530_v32, 5  ;;  %v368_v39 = vrot.slane %v367_v30, 4  ;;  %v3815_v42 = vld [vmem:[%s4146_s28 + $0x24] sm:$0xff]  }
  0x3d   : > { %2419 = vmatprep.mubr.bf16.mxu1 %v3808_v52  ;;  %3567 = vmatpush3.bf16.msra.mxu1 %v3813_v13  ;;  %v383_v48 = vsel %vm4169_vm5, %v378_v41, %v382_v29  ;;  %v273_v52 = vld [vmem:[%s4146_s28 + $0x30] sm:$0xf]  ;;  %v401_v8 = vor.u32 %v400_v2, %v396_v1  ;;  %v278_v28 = vld [vmem:[%s4146_s28 + $0x44] sm:$0x1]  ;;  %v3826_v34 = vld [vmem:[%s4146_s28 + $0x48] sm:$0xff]  }
  0x3e   : > { %2322 = vmatprep.mubr.bf16.mxu0 %v2993_v15  ;;  %v595_v43 = vsel %vm4160_vm4, %v3002_v35, %v594_v36  ;;  %v596_v44 = vrot.slane %v594_v36, 4  ;;  %3504 = vmatprep.subr.bf16.mxu0 %v3816_v38  ;;  %v373_v45 = vsel %vm4169_vm5, %v368_v39, %v372_v27  ;;  %v385_v57 = vshrl.u32 %v273_v52, 16  ;;  %v277_v27 = vld [vmem:[%s4146_s28 + $0x40] sm:$0xf]  ;;  %v535_v41 = vld [vmem:[%s4146_s28 + $0x3c] sm:$0xe] }
  0x3f   : > { %3568 = vmatprep.subr.bf16.mxu1 %v3817_v40  ;;  %v2994_v53 = vcombine.low %v373_v45, %v383_v48  ;;  %v388_v58 = vshll.u32 %v273_v52, 16  ;;  %v402_v15 = vrot.slane %v401_v8, 4  ;;  %v418_v31 = vshll.u32 %v277_v27, 16  ;;  %v3829_v52 = vld [vmem:[%s4850_s1 + $0x1e8] sm:$0xff]   ;;  %v281_v2 = vld [vmem:[%s4146_s28 + $0x50] sm:$0x1] }
  0x40   : > { %v598_v49 = vsel %vm4160_vm4, %v596_v44, %v597_v37  ;;  %3505 = vmatpush3.bf16.msra.mxu0 %v3818_v47  ;;  %v387_v63 = vrot.slane %v385_v57, 4  ;;  %v422_v32 = vshrl.u32 %v277_v27, 16  ;;  %v428_v33 = vshll.u32 %v278_v28, 16  ;;  %v3832_v8 = vld [vmem:[%s4146_s28 + $0x54] sm:$0xff]  }
  0x41   : > { %v3010_v54 = vcombine.low %v595_v43, %v598_v49  ;;  %3569 = vmatpush3.bf16.msra.mxu1 %v3819_v50  ;;  %v390_v0 = vrot.slane %v388_v58, 5  ;;  %3506 = vmatprep.subr.bf16.mxu0 %v3822_v12  ;;  %v407_v21 = vsel %vm4169_vm5, %v402_v15, %v406_v3  ;;  %v420_v37 = vrot.slane %v418_v31, 5  ;;  %v537_v43 = vld [vmem:[%s4146_s28 + $0x44] sm:$0x1]  ;;  %v3828_v49 = vld [vmem:[%s4850_s1 + $0x168] sm:$0xff]  }
  0x42   : > { %3570 = vmatprep.subr.bf16.mxu1 %v3823_v14  ;;  %v424_v38 = vrot.slane %v422_v32, 4  ;;  %v430_v39 = vrot.slane %v428_v33, 5  ;;  %v3004_v45 = vrot.slane %v535_v41, 9  ;;  %v611_v48 = vrot.slane %v537_v43, 5  ;;  %v3830_v58 = vld [vmem:[%s4850_s1 + $0x128] sm:$0xff]   ;;  %v3837_v33 = vld [vmem:[%s4850_s1 + $0x1b0] sm:$0xff]  }
  0x43   : > { %2323 = vmatmul.mubr.bf16.gmra.mrb[8].mxu0 %v3809_v6  ;;  %v391_v4 = vor.u32 %v390_v0, %v387_v63  ;;  %v533_v6 = vld [vmem:[%s4146_s28 + $0x34] sm:$0xf]  ;;  %v452_v7 = vshll.u32 %v281_v2, 16  ;;  %v538_v15 = vld [vmem:[%s4146_s28 + $0x48] sm:$0xe] }
  0x44   : > { %2420 = vmatmul.mubr.bf16.gmra.mrb[8].mxu1 %v3009_v16  ;;  %2330 = vmatprep.mubr.bf16.mxu0 %v2994_v53  ;;  %v601_v10 = vrot.slane %v533_v6, 5  ;;  %v3821_v16 = vld [vmem:[%s4146_s28 + $0x30] sm:$0xff]   ;;  %v425_v44 = vor.u32 %v424_v38, %v420_v37  ;;  %v284_v38 = vld [vmem:[%s4146_s28 + $0x5c] sm:$0x1] }
  0x45   : > { %2427 = vmatprep.mubr.bf16.mxu1 %v3814_v24  ;;  %v392_v13 = vrot.slane %v391_v4, 4  ;;  %v276_v24 = vld [vmem:[%s4146_s28 + $0x3c] sm:$0xf]  ;;  %3507 = vmatpush3.bf16.msra.mxu0 %v3824_v20  ;;  %v476_v43 = vshll.u32 %v284_v38, 16 }
  0x46   : > { %v602_v17 = vsel %vm4160_vm4, %v3003_v9, %v601_v10  ;;  %v603_v18 = vrot.slane %v601_v10, 4  ;;  %v409_v29 = vshrl.u32 %v276_v24, 16  ;;  %v412_v30 = vshll.u32 %v276_v24, 16  ;;  %3571 = vmatpush3.bf16.msra.mxu1 %v3825_v23  ;;  %3508 = vmatprep.subr.bf16.mxu0 %v3828_v49  ;;  %v3835_v24 = vld [vmem:[%s4850_s1 + $0x1f0] sm:$0xff]  }
  0x47   : > { %v397_v19 = vsel %vm4169_vm5, %v392_v13, %v396_v1  ;;  %v426_v53 = vrot.slane %v425_v44, 4  ;;  %3572 = vmatprep.subr.bf16.mxu1 %v3829_v52  ;;  %v280_v1 = vld [vmem:[%s4146_s28 + $0x4c] sm:$0xf]  ;;  %v454_v13 = vrot.slane %v452_v7, 5  ;;  %v3838_v44 = vld [vmem:[%s4146_s28 + $0x60] sm:$0xff]   ;;  %v3843_v7 = vld [vmem:[%s4850_s1 + $0x1b8] sm:$0xff]  }
  0x48   : > { %v605_v22 = vsel %vm4160_vm4, %v603_v18, %v604_v11  ;;  %v2995_v25 = vcombine.low %v397_v19, %v407_v21  ;;  %v411_v35 = vrot.slane %v409_v29, 4  ;;  %v414_v36 = vrot.slane %v412_v30, 5  ;;  %v3836_v30 = vld [vmem:[%s4850_s1 + $0x130] sm:$0xff]  }
  0x49   : > { %v3011_v26 = vcombine.low %v602_v17, %v605_v22  ;;  %v431_v59 = vsel %vm4169_vm5, %v426_v53, %v430_v39  ;;  %3509 = vmatpush3.bf16.msra.mxu0 %v3830_v58  ;;  %v442_v5 = vshll.u32 %v280_v1, 16  ;;  %v446_v6 = vshrl.u32 %v280_v1, 16  ;;  %v540_v17 = vld [vmem:[%s4146_s28 + $0x50] sm:$0x1]  ;;  %v541_v53 = vld [vmem:[%s4146_s28 + $0x54] sm:$0xe] }
  0x4a   : > { %v415_v40 = vor.u32 %v414_v36, %v411_v35  ;;  %3573 = vmatpush3.bf16.msra.mxu1 %v3831_v61  ;;  %v3005_v19 = vrot.slane %v538_v15, 9  ;;  %v618_v21 = vrot.slane %v540_v17, 5  ;;  %v3834_v22 = vld [vmem:[%s4850_s1 + $0x170] sm:$0xff]   ;;  %v3140_v17 = vld [vmem:[%s4146_s28 + $0x1c] sm:$0xf] }
  0x4b   : > { %2331 = vmatmul.mubr.bf16.gmra.mrb[12].mxu0 %v3815_v42  ;;  %v536_v42 = vld [vmem:[%s4146_s28 + $0x40] sm:$0xf]  ;;  %v444_v11 = vrot.slane %v442_v5, 5  ;;  %v448_v12 = vrot.slane %v446_v6, 4  ;;  %3510 = vmatprep.subr.bf16.mxu0 %v3834_v22  ;;  %v1257_v22 = vshrl.u32 %v3140_v17, 16 }
  0x4c   : > { %2428 = vmatmul.mubr.bf16.gmra.mrb[12].mxu1 %v3010_v54  ;;  %2338 = vmatprep.mubr.bf16.mxu0 %v2995_v25  ;;  %v608_v47 = vrot.slane %v536_v42, 5  ;;  %v416_v50 = vrot.slane %v415_v40, 4  ;;  %v3827_v54 = vld [vmem:[%s4146_s28 + $0x3c] sm:$0xff]  }
  0x4d   : > { %2435 = vmatprep.mubr.bf16.mxu1 %v3820_v62  ;;  %v279_v62 = vld [vmem:[%s4146_s28 + $0x48] sm:$0xf]  ;;  %v449_v18 = vor.u32 %v448_v12, %v444_v11  ;;  %3574 = vmatprep.subr.bf16.mxu1 %v3835_v24  ;;  %v3075_v12 = vld [vmem:[%s4146_s28 + $0x14] sm:$0x1] }
  0x4e   : > { %v609_v55 = vsel %vm4160_vm4, %v3004_v45, %v608_v47  ;;  %v610_v56 = vrot.slane %v608_v47, 4  ;;  %v421_v57 = vsel %vm4169_vm5, %v416_v50, %v420_v37  ;;  %v433_v3 = vshrl.u32 %v279_v62, 16  ;;  %3511 = vmatpush3.bf16.msra.mxu0 %v3836_v30  ;;  %v283_v37 = vld [vmem:[%s4146_s28 + $0x58] sm:$0xf]  ;;  %3575 = vmatpush3.bf16.msra.mxu1 %v3837_v33 }
  0x4f   : > { %v2996_v63 = vcombine.low %v421_v57, %v431_v59  ;;  %v436_v4 = vshll.u32 %v279_v62, 16  ;;  %v450_v25 = vrot.slane %v449_v18, 4  ;;  %v466_v41 = vshll.u32 %v283_v37, 16  ;;  %v3841_v62 = vld [vmem:[%s4850_s1 + $0x1f8] sm:$0xff]   ;;  %v3141_v18 = vld [vmem:[%s4146_s28 + $0x20] sm:$0x1] }
  0x50   : > { %v612_v60 = vsel %vm4160_vm4, %v610_v56, %v611_v48  ;;  %v435_v9 = vrot.slane %v433_v3, 4  ;;  %v470_v42 = vshrl.u32 %v283_v37, 16  ;;  %v478_v50 = vrot.slane %v476_v43, 5  ;;  %3576 = vmatprep.subr.bf16.mxu1 %v3841_v62  ;;  %v4406_v37 = vld [vmem:[%s4850_s1 + $0x200] sm:$0xff]  }
  0x51   : > { %v3012_v0 = vcombine.low %v609_v55, %v612_v60  ;;  %v438_v10 = vrot.slane %v436_v4, 5  ;;  %v455_v31 = vsel %vm4169_vm5, %v450_v25, %v454_v13  ;;  %v468_v48 = vrot.slane %v466_v41, 5  ;;  %v543_v55 = vld [vmem:[%s4146_s28 + $0x5c] sm:$0x1]  ;;  %v3142_v62 = vld [vmem:[%s4146_s28 + $0x24] sm:$0xf] }
  0x52   : > { %v472_v49 = vrot.slane %v470_v42, 4  ;;  %v3006_v57 = vrot.slane %v541_v53, 9  ;;  %v625_v59 = vrot.slane %v543_v55, 5  ;;  %v3840_v60 = vld [vmem:[%s4850_s1 + $0x178] sm:$0xff]   ;;  %3577 = vmatpush3.bf16.msra.mxu1 %v3843_v7  ;;  %v1052_v15 = vrot.slane %v3075_v12, 5 }
  0x53   : > { %2339 = vmatmul.mubr.bf16.gmra.mrb[16].mxu0 %v3821_v16  ;;  %v439_v14 = vor.u32 %v438_v10, %v435_v9  ;;  %v539_v16 = vld [vmem:[%s4146_s28 + $0x4c] sm:$0xf]  ;;  %3512 = vmatprep.subr.bf16.mxu0 %v3840_v60  ;;  %v3842_v4 = vld [vmem:[%s4850_s1 + $0x138] sm:$0xff]   ;;  %v1263_v25 = vshll.u32 %v3141_v18, 16 }
  0x54   : > { %2436 = vmatmul.mubr.bf16.gmra.mrb[16].mxu1 %v3011_v26  ;;  %2346 = vmatprep.mubr.bf16.mxu0 %v2996_v63  ;;  %v615_v20 = vrot.slane %v539_v16, 5  ;;  %v3833_v26 = vld [vmem:[%s4146_s28 + $0x48] sm:$0xff]   ;;  %v473_v56 = vor.u32 %v472_v49, %v468_v48  ;;  %v3139_v16 = vld [vmem:[%s4146_s28 + $0x18] sm:$0xf] }
  0x55   : > { %2443 = vmatprep.mubr.bf16.mxu1 %v3826_v34  ;;  %v440_v23 = vrot.slane %v439_v14, 4  ;;  %v282_v34 = vld [vmem:[%s4146_s28 + $0x54] sm:$0xf]  ;;  %3513 = vmatpush3.bf16.msra.mxu0 %v3842_v4  ;;  %v3144_v4 = vld [vmem:[%s4146_s28 + $0x2c] sm:$0x1] }
  0x56   : > { %v616_v27 = vsel %vm4160_vm4, %v3005_v19, %v615_v20  ;;  %v617_v28 = vrot.slane %v615_v20, 4  ;;  %v457_v39 = vshrl.u32 %v282_v34, 16  ;;  %v460_v40 = vshll.u32 %v282_v34, 16  ;;  %3642 = vmatprep.subr.bf16.mxu0 %v4406_v37  ;;  %3674 = vmatprep.subr.bf16.mxu1 %v4406_v37 }
  0x57   : > { %v445_v29 = vsel %vm4169_vm5, %v440_v23, %v444_v11  ;;  %v474_v63 = vrot.slane %v473_v56, 4  ;;  %v3074_v11 = vld [vmem:[%s4146_s28 + $0x10] sm:$0xf]  ;;  %v1244_v19 = vshrl.u32 %v3139_v16, 16  ;;  %v1247_v20 = vshll.u32 %v3139_v16, 16 }
  0x58   : > { %v619_v32 = vsel %vm4160_vm4, %v617_v28, %v618_v21  ;;  %v2997_v35 = vcombine.low %v445_v29, %v455_v31  ;;  %v459_v45 = vrot.slane %v457_v39, 4  ;;  %v462_v47 = vrot.slane %v460_v40, 5  ;;  %v3077_v56 = vld [vmem:[%s4146_s28 + $0x1c] sm:$0xf]  ;;  %v3046_v16 = vld [vmem:[%s4146_s28 + $0x20] sm:$0x1] }
  0x59   : > { %v3013_v36 = vcombine.low %v616_v27, %v619_v32  ;;  %v479_v5 = vsel %vm4169_vm5, %v474_v63, %v478_v50  ;;  %v1049_v14 = vrot.slane %v3074_v11, 5  ;;  %v1253_v21 = vshll.u32 %v3140_v17, 16  ;;  %v3042_v27 = vld [vmem:[%s4146_s28 + $0x10] sm:$0xf]  ;;  %v3043_v32 = vld [vmem:[%s4146_s28 + $0x14] sm:$0x1] }
  0x5a   : > { %v463_v52 = vor.u32 %v462_v47, %v459_v45  ;;  %v1246_v28 = vrot.slane %v1244_v19, 4  ;;  %v1249_v29 = vrot.slane %v1247_v20, 5  ;;  %v1259_v31 = vrot.slane %v1257_v22, 4  ;;  %v3844_v50 = vld [vmem:[%s4146_s28 + $0x18] sm:$0xff]   ;;  %v3143_v63 = vld [vmem:[%s4146_s28 + $0x28] sm:$0xf] }
  0x5b   : > { %2347 = vmatmul.mubr.bf16.gmra.mrb[20].mxu0 %v3827_v54  ;;  %v542_v54 = vld [vmem:[%s4146_s28 + $0x58] sm:$0xf]  ;;  %v1051_v24 = vrot.slane %v1049_v14, 4  ;;  %v1255_v30 = vrot.slane %v1253_v21, 5  ;;  %v1265_v34 = vrot.slane %v1263_v25, 5  ;;  %v777_v41 = vshll.u32 %v3042_v27, 16 }
  0x5c   : > { %2444 = vmatmul.mubr.bf16.gmra.mrb[20].mxu1 %v3012_v0  ;;  %2354 = vmatprep.mubr.bf16.mxu0 %v2997_v35  ;;  %v622_v58 = vrot.slane %v542_v54, 5  ;;  %v464_v61 = vrot.slane %v463_v52, 4  ;;  %v3839_v0 = vld [vmem:[%s4146_s28 + $0x54] sm:$0xff]   ;;  %v1250_v39 = vor.u32 %v1249_v29, %v1246_v28  ;;  %v787_v45 = vshll.u32 %v3043_v32, 16  ;;  %v4428_v11 = vld [vmem:[%s4850_s1 + $0x208] sm:$0xff]  }
  0x5d   : > { %2451 = vmatprep.mubr.bf16.mxu1 %v3832_v8  ;;  %v3073_v8 = vld [vmem:[%s4146_s28 + $0xc] sm:$0xe]  ;;  %v1053_v33 = vsel %vm4160_vm4, %v1051_v24, %v1052_v15  ;;  %v1260_v40 = vor.u32 %v1259_v31, %v1255_v30  ;;  %v779_v49 = vrot.slane %v777_v41, 5  ;;  %v3076_v52 = vld [vmem:[%s4146_s28 + $0x18] sm:$0xe]  ;;  %v1281_v15 = vshrl.u32 %v3143_v63, 16 }
  0x5e   : > { %v623_v1 = vsel %vm4160_vm4, %v3006_v57, %v622_v58  ;;  %v624_v2 = vrot.slane %v622_v58, 4  ;;  %v469_v3 = vsel %vm4169_vm5, %v464_v61, %v468_v48  ;;  %v3097_v13 = vrot.slane %v3073_v8, 9  ;;  %v3078_v57 = vld [vmem:[%s4146_s28 + $0x20] sm:$0x1]  ;;  %v3079_v29 = vld [vmem:[%s4146_s28 + $0x24] sm:$0xe] }
  0x5f   : > { %v2998_v9 = vcombine.low %v469_v3, %v479_v5  ;;  %v1251_v47 = vrot.slane %v1250_v39, 4  ;;  %v1261_v48 = vrot.slane %v1260_v40, 4  ;;  %v789_v55 = vrot.slane %v787_v45, 5  ;;  %v3044_v5 = vld [vmem:[%s4146_s28 + $0x18] sm:$0xf] }
  0x60   : > { %v626_v6 = vsel %vm4160_vm4, %v624_v2, %v625_v59  ;;  %v1050_v23 = vsel %vm4160_vm4, %v3097_v13, %v1049_v14  ;;  %v3098_v60 = vrot.slane %v3076_v52, 9  ;;  %v1056_v61 = vrot.slane %v3077_v56, 5  ;;  %v3081_v40 = vld [vmem:[%s4146_s28 + $0x2c] sm:$0x1]  ;;  %v3146_v52 = vld [vmem:[%s4146_s28 + $0x34] sm:$0xf] }
  0x61   : > { %v3014_v10 = vcombine.low %v623_v1, %v626_v6  ;;  %v3105_v38 = vcombine.low %v1050_v23, %v1053_v33  ;;  %v1256_v58 = vsel %vm4169_vm5, %v1251_v47, %v1255_v30  ;;  %v1266_v59 = vsel %vm4169_vm5, %v1261_v48, %v1265_v34  ;;  %v3080_v34 = vld [vmem:[%s4146_s28 + $0x28] sm:$0xf]  ;;  %v3145_v47 = vld [vmem:[%s4146_s28 + $0x30] sm:$0xf] }
  0x62   : > { %v1059_v3 = vrot.slane %v3078_v57, 5  ;;  %v1057_v6 = vsel %vm4160_vm4, %v3098_v60, %v1056_v61  ;;  %v1058_v7 = vrot.slane %v1056_v61, 4  ;;  %v1268_v8 = vshrl.u32 %v3142_v62, 16  ;;  %v3846_v56 = vld [vmem:[%s4146_s28 + $0x24] sm:$0xff]   ;;  %v3147_v57 = vld [vmem:[%s4146_s28 + $0x38] sm:$0x1] }
  0x63   : > { %2355 = vmatmul.mubr.bf16.gmra.mrb[24].mxu0 %v3833_v26  ;;  %v3041_v26 = vld [vmem:[%s4146_s28 + $0xc] sm:$0xf]  ;;  %v1277_v14 = vshll.u32 %v3143_v63, 16  ;;  %v1287_v20 = vshll.u32 %v3144_v4, 16  ;;  %v1283_v24 = vrot.slane %v1281_v15, 4  ;;  %v792_v28 = vshrl.u32 %v3044_v5, 16 }
  0x64   : > { %2452 = vmatmul.mubr.bf16.gmra.mrb[24].mxu1 %v3013_v36  ;;  %2362 = vmatprep.mubr.bf16.mxu0 %v2998_v9  ;;  %v768_v35 = vshrl.u32 %v3041_v26, 16  ;;  %v771_v36 = vshll.u32 %v3041_v26, 16  ;;  %v1271_v9 = vshll.u32 %v3142_v62, 16  ;;  %v1060_v17 = vsel %vm4160_vm4, %v1058_v7, %v1059_v3  ;;  %v4480_v15 = vld [vmem:[%s4850_s1 + $0x220] sm:$0xff]  }
  0x65   : > { %2459 = vmatprep.mubr.bf16.mxu1 %v3838_v44  ;;  %v781_v44 = vshrl.u32 %v3042_v27, 16  ;;  %v1270_v18 = vrot.slane %v1268_v8, 4  ;;  %v3106_v22 = vcombine.low %v1057_v6, %v1060_v17  ;;  %v1279_v23 = vrot.slane %v1277_v14, 5  ;;  %v3049_v6 = vld [vmem:[%s4146_s28 + $0x2c] sm:$0x1] }
  0x66   : > { %v770_v42 = vrot.slane %v768_v35, 4  ;;  %v773_v43 = vrot.slane %v771_v36, 5  ;;  %v1273_v19 = vrot.slane %v1271_v9, 5  ;;  %v1289_v27 = vrot.slane %v1287_v20, 5  ;;  %v4444_v35 = vld [vmem:[%s4850_s1 + $0x210] sm:$0xff]  }
  0x67   : > { %v783_v54 = vrot.slane %v781_v44, 4  ;;  %v1284_v30 = vor.u32 %v1283_v24, %v1279_v23  ;;  %v795_v31 = vshll.u32 %v3044_v5, 16  ;;  %v811_v39 = vshll.u32 %v3046_v16, 16  ;;  %v3082_v20 = vld [vmem:[%s4146_s28 + $0x30] sm:$0xe] }
  0x68   : > { %v774_v53 = vor.u32 %v773_v43, %v770_v42  ;;  %v1274_v26 = vor.u32 %v1273_v19, %v1270_v18  ;;  %v3099_v41 = vrot.slane %v3079_v29, 9  ;;  %v1295_v63 = vshll.u32 %v3145_v47, 16 }
  0x69   : > { %v784_v2 = vor.u32 %v783_v54, %v779_v49  ;;  %v1285_v42 = vrot.slane %v1284_v30, 4  ;;  %v797_v43 = vrot.slane %v795_v31, 5  ;;  %v1301_v5 = vshll.u32 %v3146_v52, 16  ;;  %v3148_v31 = vld [vmem:[%s4146_s28 + $0x3c] sm:$0xf] }
  0x6a   : > { %v775_v1 = vrot.slane %v774_v53, 4  ;;  %v1275_v36 = vrot.slane %v1274_v26, 4  ;;  %v1297_v8 = vrot.slane %v1295_v63, 5  ;;  %v1305_v9 = vshrl.u32 %v3146_v52, 16  ;;  %v3084_v26 = vld [vmem:[%s4146_s28 + $0x38] sm:$0x1] }
  0x6b   : > { %2363 = vmatmul.mubr.bf16.gmra.mrb[28].mxu0 %v3839_v0  ;;  %v3163_v0 = vcombine.low %v1256_v58, %v1266_v59  ;;  %v785_v13 = vrot.slane %v784_v2, 4  ;;  %v1290_v53 = vsel %vm4169_vm5, %v1285_v42, %v1289_v27  ;;  %v1292_v58 = vshrl.u32 %v3145_v47, 16  ;;  %v4462_v59 = vld [vmem:[%s4850_s1 + $0x218] sm:$0xff]   ;;  %v3855_v42 = vld [vmem:[%s4850_s1 + $0x228] sm:$0xff]   ;;  %v3149_v47 = vld [vmem:[%s4146_s28 + $0x40] sm:$0xf] }
  0x6c   : > { %2460 = vmatmul.mubr.bf16.gmra.mrb[28].mxu1 %v3014_v10  ;;  %2500 = vmatprep.mubr.bf16.mxu0 %v3105_v38  ;;  %v3045_v10 = vld [vmem:[%s4146_s28 + $0x1c] sm:$0xf]  ;;  %v780_v12 = vsel %vm4169_vm5, %v775_v1, %v779_v49  ;;  %v794_v38 = vrot.slane %v792_v28, 4  ;;  %v1280_v48 = vsel %vm4169_vm5, %v1275_v36, %v1279_v23  ;;  %v813_v49 = vrot.slane %v811_v39, 5  ;;  %v3048_v1 = vld [vmem:[%s4146_s28 + $0x28] sm:$0xf] }
  0x6d   : > { %2597 = vmatprep.mubr.bf16.mxu1 %v3163_v0  ;;  %v790_v21 = vsel %vm4169_vm5, %v785_v13, %v789_v55  ;;  %v801_v32 = vshll.u32 %v3045_v10, 16  ;;  %v805_v33 = vshrl.u32 %v3045_v10, 16  ;;  %v3164_v60 = vcombine.low %v1280_v48, %v1290_v53  ;;  %v3047_v0 = vld [vmem:[%s4146_s28 + $0x24] sm:$0xf] }
  0x6e   : > { %v3065_v25 = vcombine.low %v780_v12, %v790_v21  ;;  %v798_v54 = vor.u32 %v797_v43, %v794_v38  ;;  %v1294_v4 = vrot.slane %v1292_v58, 4  ;;  %v1311_v10 = vshll.u32 %v3147_v57, 16  ;;  %v3083_v21 = vld [vmem:[%s4146_s28 + $0x34] sm:$0xf]  ;;  %v3150_v48 = vld [vmem:[%s4146_s28 + $0x44] sm:$0x1] }
  0x6f   : > { %v803_v44 = vrot.slane %v801_v32, 5  ;;  %v807_v45 = vrot.slane %v805_v33, 4  ;;  %v1303_v14 = vrot.slane %v1301_v5, 5  ;;  %v1307_v18 = vrot.slane %v1305_v9, 4  ;;  %v3857_v5 = vld [vmem:[%s4850_s1 + $0x230] sm:$0xff]  }
  0x70   : > { %v799_v2 = vrot.slane %v798_v54, 4  ;;  %v1298_v17 = vor.u32 %v1297_v8, %v1294_v4  ;;  %v1313_v19 = vrot.slane %v1311_v10, 5  ;;  %v819_v23 = vshll.u32 %v3047_v0, 16  ;;  %v3050_v54 = vld [vmem:[%s4146_s28 + $0x30] sm:$0xf] }
  0x71   : > { %v808_v55 = vor.u32 %v807_v45, %v803_v44  ;;  %v825_v24 = vshll.u32 %v3048_v1, 16  ;;  %v1308_v28 = vor.u32 %v1307_v18, %v1303_v14  ;;  %v835_v29 = vshll.u32 %v3049_v6, 16  ;;  %v3052_v4 = vld [vmem:[%s4146_s28 + $0x38] sm:$0x1]  ;;  %v3085_v10 = vld [vmem:[%s4146_s28 + $0x3c] sm:$0xe] }
  0x72   : > { %v804_v12 = vsel %vm4169_vm5, %v799_v2, %v803_v44  ;;  %v1299_v27 = vrot.slane %v1298_v17, 4  ;;  %v3100_v30 = vrot.slane %v3082_v20, 9  ;;  %v821_v33 = vrot.slane %v819_v23, 5  ;;  %v3087_v17 = vld [vmem:[%s4146_s28 + $0x44] sm:$0x1] }
  0x73   : > { %2501 = vmatmul.mubr.bf16.vlgmr.msra.gmra.mrb[32].mxu0 %v3065_v25  ;;  %v809_v3 = vrot.slane %v808_v55, 4  ;;  %v829_v25 = vshrl.u32 %v3048_v1, 16  ;;  %v1309_v38 = vrot.slane %v1308_v28, 4  ;;  %v837_v39 = vrot.slane %v835_v29, 5  ;;  %v3051_v55 = vld [vmem:[%s4146_s28 + $0x34] sm:$0xf] }
  0x74   : > { %2598 = vmatmul.mubr.bf16.vlgmr.msra.gmra.mrb[32].mxu1 %v3844_v50  ;;  %3643 = vmatpush3.bf16.msra.mxu0 %v4406_v37  ;;  %v1063_v50 = vrot.slane %v3080_v34, 5  ;;  %v827_v34 = vrot.slane %v825_v24, 5  ;;  %v1073_v45 = vrot.slane %v3084_v26, 5  ;;  %v1319_v53 = vshll.u32 %v3148_v31, 16 }
  0x75   : > { %3682 = vmatpush3.bf16.msra.mxu1 %v4406_v37  ;;  %2508 = vmatprep.mubr.bf16.mxu0 %v3106_v22  ;;  %v1066_v37 = vrot.slane %v3081_v40, 5  ;;  %v816_v22 = vshrl.u32 %v3047_v0, 16  ;;  %v831_v36 = vrot.slane %v829_v25, 4  ;;  %v3848_v40 = vld [vmem:[%s4146_s28 + $0x30] sm:$0xff]   ;;  %v1329_v63 = vshrl.u32 %v3149_v47, 16 }
  0x76   : > { %3675 = vmatprep.subr.bf16.mxu1 %v4428_v11  ;;  %3644 = vmatprep.subr.bf16.mxu0 %v4428_v11  ;;  %v1064_v61 = vsel %vm4160_vm4, %v3099_v41, %v1063_v50  ;;  %v1065_v62 = vrot.slane %v1063_v50, 4  ;;  %v1070_v41 = vrot.slane %v3083_v21, 5  ;;  %v1314_v50 = vsel %vm4169_vm5, %v1309_v38, %v1313_v19  ;;  %v3151_v21 = vld [vmem:[%s4146_s28 + $0x48] sm:$0xf] }
  0x77   : > { %2605 = vmatprep.mubr.bf16.mxu1 %v3164_v60  ;;  %v818_v32 = vrot.slane %v816_v22, 4  ;;  %v832_v44 = vor.u32 %v831_v36, %v827_v34  ;;  %v1331_v9 = vrot.slane %v1329_v63, 4  ;;  %v853_v19 = vshrl.u32 %v3051_v55, 16  ;;  %v3859_v22 = vld [vmem:[%s4850_s1 + $0x238] sm:$0xff]   ;;  %v3088_v63 = vld [vmem:[%s4146_s28 + $0x48] sm:$0xe] }
  0x78   : > { %3645 = vmatpush3.bf16.msra.mxu0 %v4428_v11  ;;  %v1067_v7 = vsel %vm4160_vm4, %v1065_v62, %v1066_v37  ;;  %v1071_v37 = vsel %vm4160_vm4, %v3100_v30, %v1070_v41  ;;  %v1072_v52 = vrot.slane %v1070_v41, 4  ;;  %v1325_v62 = vshll.u32 %v3149_v47, 16 }
  0x79   : > { %3683 = vmatpush3.bf16.msra.mxu1 %v4428_v11  ;;  %3646 = vmatprep.subr.bf16.mxu0 %v4444_v35  ;;  %v814_v11 = vsel %vm4169_vm5, %v809_v3, %v813_v49  ;;  %v3107_v13 = vcombine.low %v1064_v61, %v1067_v7  ;;  %v822_v43 = vor.u32 %v821_v33, %v818_v32  ;;  %v1316_v49 = vshrl.u32 %v3148_v31, 16  ;;  %v3850_v33 = vld [vmem:[%s4146_s28 + $0x3c] sm:$0xff]  }
  0x7a   : > { %3676 = vmatprep.subr.bf16.mxu1 %v4444_v35  ;;  %v3066_v16 = vcombine.low %v804_v12, %v814_v11  ;;  %v833_v58 = vrot.slane %v832_v44, 4  ;;  %v1321_v61 = vrot.slane %v1319_v53, 5  ;;  %v1335_v3 = vshll.u32 %v3150_v48, 16  ;;  %v3086_v12 = vld [vmem:[%s4146_s28 + $0x40] sm:$0xf] }
  0x7b   : > { %v823_v57 = vrot.slane %v822_v43, 4  ;;  %v1318_v60 = vrot.slane %v1316_v49, 4  ;;  %v1327_v8 = vrot.slane %v1325_v62, 5  ;;  %v859_v20 = vshll.u32 %v3052_v4, 16  ;;  %v3053_v43 = vld [vmem:[%s4146_s28 + $0x3c] sm:$0xf] }
  0x7c   : > { %2606 = vmatmul.mubr.bf16.gmra.mrb[36].mxu1 %v3846_v56  ;;  %3647 = vmatpush3.bf16.msra.mxu0 %v4444_v35  ;;  %v838_v1 = vsel %vm4169_vm5, %v833_v58, %v837_v39  ;;  %v1337_v11 = vrot.slane %v1335_v3, 5  ;;  %v3101_v26 = vrot.slane %v3085_v10, 9  ;;  %v855_v30 = vrot.slane %v853_v19, 4  ;;  %v3089_v4 = vld [vmem:[%s4146_s28 + $0x4c] sm:$0xf] }
  0x7d   : > { %3684 = vmatpush3.bf16.msra.mxu1 %v4444_v35  ;;  %2509 = vmatmul.mubr.bf16.gmra.mrb[36].mxu0 %v3066_v16  ;;  %v1304_v35 = vsel %vm4169_vm5, %v1299_v27, %v1303_v14  ;;  %v828_v0 = vsel %vm4169_vm5, %v823_v57, %v827_v34  ;;  %v1322_v7 = vor.u32 %v1321_v61, %v1318_v60  ;;  %v843_v14 = vshll.u32 %v3050_v54, 16  ;;  %v3152_v27 = vld [vmem:[%s4146_s28 + $0x4c] sm:$0xf]  ;;  %v3054_v57 = vld [vmem:[%s4146_s28 + $0x40] sm:$0xf] }
  0x7e   : > { %3677 = vmatprep.subr.bf16.mxu1 %v4462_v59  ;;  %3648 = vmatprep.subr.bf16.mxu0 %v4462_v59  ;;  %v3165_v56 = vcombine.low %v1304_v35, %v1314_v50  ;;  %v3067_v6 = vcombine.low %v828_v0, %v838_v1  ;;  %v849_v16 = vshll.u32 %v3051_v55, 16  ;;  %v1332_v18 = vor.u32 %v1331_v9, %v1327_v8  ;;  %v3153_v35 = vld [vmem:[%s4146_s28 + $0x50] sm:$0x1]  ;;  %v3055_v61 = vld [vmem:[%s4146_s28 + $0x44] sm:$0x1] }
  0x7f   : > { %2516 = vmatprep.mubr.bf16.mxu0 %v3107_v13  ;;  %v840_v13 = vshrl.u32 %v3050_v54, 16  ;;  %v845_v24 = vrot.slane %v843_v14, 5  ;;  %v861_v31 = vrot.slane %v859_v20, 5  ;;  %v1077_v34 = vrot.slane %v3086_v12, 5  ;;  %v3090_v9 = vld [vmem:[%s4146_s28 + $0x50] sm:$0x1] }
  0x80   : > { %3649 = vmatpush3.bf16.msra.mxu0 %v4462_v59  ;;  %2613 = vmatprep.mubr.bf16.mxu1 %v3165_v56  ;;  %v851_v25 = vrot.slane %v849_v16, 5  ;;  %v1333_v29 = vrot.slane %v1332_v18, 4  ;;  %v1080_v36 = vrot.slane %v3087_v17, 5  ;;  %v1340_v38 = vshrl.u32 %v3151_v21, 16  ;;  %v3154_v14 = vld [vmem:[%s4146_s28 + $0x54] sm:$0xf] }
  0x81   : > { %3685 = vmatpush3.bf16.msra.mxu1 %v4462_v59  ;;  %3650 = vmatprep.subr.bf16.mxu0 %v4480_v15  ;;  %v1074_v59 = vsel %vm4160_vm4, %v1072_v52, %v1073_v45  ;;  %v842_v23 = vrot.slane %v840_v13, 4  ;;  %v1343_v41 = vshll.u32 %v3151_v21, 16  ;;  %v1078_v47 = vsel %vm4160_vm4, %v3101_v26, %v1077_v34  ;;  %v3155_v19 = vld [vmem:[%s4146_s28 + $0x58] sm:$0xf] }
  0x82   : > { %3678 = vmatprep.subr.bf16.mxu1 %v4480_v15  ;;  %v3108_v2 = vcombine.low %v1071_v37, %v1074_v59  ;;  %v1338_v39 = vsel %vm4169_vm5, %v1333_v29, %v1337_v11  ;;  %v1079_v48 = vrot.slane %v1077_v34, 4  ;;  %v1342_v50 = vrot.slane %v1340_v38, 4 }
  0x83   : > { %v846_v32 = vor.u32 %v845_v24, %v842_v23  ;;  %v1345_v37 = vrot.slane %v1343_v41, 5  ;;  %v1353_v55 = vshrl.u32 %v3152_v27, 16  ;;  %v1359_v56 = vshll.u32 %v3153_v35, 16  ;;  %v3156_v24 = vld [vmem:[%s4146_s28 + $0x5c] sm:$0x1] }
  0x84   : > { %3651 = vmatpush3.bf16.msra.mxu0 %v4480_v15  ;;  %2614 = vmatmul.mubr.bf16.gmra.mrb[40].mxu1 %v3848_v40  ;;  %v856_v40 = vor.u32 %v855_v30, %v851_v25  ;;  %v1081_v54 = vsel %vm4160_vm4, %v1079_v48, %v1080_v36  ;;  %v864_v62 = vshrl.u32 %v3053_v43, 16  ;;  %v867_v3 = vshll.u32 %v3053_v43, 16 }
  0x85   : > { %3686 = vmatpush3.bf16.msra.mxu1 %v4480_v15  ;;  %3652 = vmatprep.subr.bf16.mxu0 %v3855_v42  ;;  %v1323_v15 = vrot.slane %v1322_v7, 4  ;;  %v847_v45 = vrot.slane %v846_v32, 4  ;;  %v3109_v60 = vcombine.low %v1078_v47, %v1081_v54  ;;  %v1346_v59 = vor.u32 %v1345_v37, %v1342_v50  ;;  %v3852_v32 = vld [vmem:[%s4146_s28 + $0x48] sm:$0xff]  }
  0x86   : > { %3679 = vmatprep.subr.bf16.mxu1 %v3855_v42  ;;  %2517 = vmatmul.mubr.bf16.gmra.mrb[40].mxu0 %v3067_v6  ;;  %v857_v49 = vrot.slane %v856_v40, 4  ;;  %v1355_v1 = vrot.slane %v1353_v55, 4  ;;  %v866_v6 = vrot.slane %v864_v62, 4  ;;  %v873_v7 = vshll.u32 %v3054_v57, 16  ;;  %v3057_v40 = vld [vmem:[%s4146_s28 + $0x4c] sm:$0xf] }
  0x87   : > { %2524 = vmatprep.mubr.bf16.mxu0 %v3108_v2  ;;  %v1328_v28 = vsel %vm4169_vm5, %v1323_v15, %v1327_v8  ;;  %v852_v53 = vsel %vm4169_vm5, %v847_v45, %v851_v25  ;;  %v1361_v2 = vrot.slane %v1359_v56, 5  ;;  %v877_v8 = vshrl.u32 %v3054_v57, 16  ;;  %v3056_v25 = vld [vmem:[%s4146_s28 + $0x48] sm:$0xf]  ;;  %v3091_v55 = vld [vmem:[%s4146_s28 + $0x54] sm:$0xe] }
  0x88   : > { %3653 = vmatpush3.bf16.msra.mxu0 %v3855_v42  ;;  %v3166_v44 = vcombine.low %v1328_v28, %v1338_v39  ;;  %v862_v58 = vsel %vm4169_vm5, %v857_v49, %v861_v31  ;;  %v869_v12 = vrot.slane %v867_v3, 5  ;;  %v883_v11 = vshll.u32 %v3055_v61, 16  ;;  %v3058_v49 = vld [vmem:[%s4146_s28 + $0x50] sm:$0x1]  ;;  %v3092_v56 = vld [vmem:[%s4146_s28 + $0x58] sm:$0xf] }
  0x89   : > { %3687 = vmatpush3.bf16.msra.mxu1 %v3855_v42  ;;  %3654 = vmatprep.subr.bf16.mxu0 %v3857_v5  ;;  %v1349_v42 = vshll.u32 %v3152_v27, 16  ;;  %v3068_v0 = vcombine.low %v852_v53, %v862_v58  ;;  %v3102_v13 = vrot.slane %v3088_v63, 9  ;;  %v875_v17 = vrot.slane %v873_v7, 5  ;;  %v3093_v61 = vld [vmem:[%s4146_s28 + $0x5c] sm:$0x1] }
  0x8a   : > { %3680 = vmatprep.subr.bf16.mxu1 %v3857_v5  ;;  %2621 = vmatprep.mubr.bf16.mxu1 %v3166_v44  ;;  %v879_v15 = vrot.slane %v877_v8, 4  ;;  %v1084_v18 = vrot.slane %v3089_v4, 5  ;;  %v870_v21 = vor.u32 %v869_v12, %v866_v6  ;;  %v1087_v23 = vrot.slane %v3090_v9, 5  ;;  %v3158_v7 = vld [vmem:[%s4146_s28 + $0x64] sm:$0xf] }
  0x8b   : > { %v1351_v52 = vrot.slane %v1349_v42, 5  ;;  %v1364_v29 = vshrl.u32 %v3154_v14, 16  ;;  %v1373_v34 = vshll.u32 %v3155_v19, 16  ;;  %v1377_v47 = vshrl.u32 %v3155_v19, 16 }
  0x8c   : > { %3655 = vmatpush3.bf16.msra.mxu0 %v3857_v5  ;;  %2622 = vmatmul.mubr.bf16.gmra.mrb[44].mxu1 %v3850_v33  ;;  %v880_v26 = vor.u32 %v879_v15, %v875_v17  ;;  %v1085_v27 = vsel %vm4160_vm4, %v3102_v13, %v1084_v18  ;;  %v1086_v28 = vrot.slane %v1084_v18, 4  ;;  %v871_v31 = vrot.slane %v870_v21, 4  ;;  %v3854_v15 = vld [vmem:[%s4146_s28 + $0x54] sm:$0xff]  }
  0x8d   : > { %3688 = vmatpush3.bf16.msra.mxu1 %v3857_v5  ;;  %3656 = vmatprep.subr.bf16.mxu0 %v3859_v22  ;;  %v1347_v5 = vrot.slane %v1346_v59, 4  ;;  %v1356_v10 = vor.u32 %v1355_v1, %v1351_v52  ;;  %v1367_v33 = vshll.u32 %v3154_v14, 16  ;;  %v1366_v39 = vrot.slane %v1364_v29, 4 }
  0x8e   : > { %3681 = vmatprep.subr.bf16.mxu1 %v3859_v22  ;;  %2525 = vmatmul.mubr.bf16.gmra.mrb[44].mxu0 %v3068_v0  ;;  %v881_v35 = vrot.slane %v880_v26, 4  ;;  %v1088_v38 = vsel %vm4160_vm4, %v1086_v28, %v1087_v23  ;;  %v876_v41 = vsel %vm4169_vm5, %v871_v31, %v875_v17  ;;  %v1375_v44 = vrot.slane %v1373_v34, 5  ;;  %v3059_v26 = vld [vmem:[%s4146_s28 + $0x54] sm:$0xf]  ;;  %v3060_v31 = vld [vmem:[%s4146_s28 + $0x58] sm:$0xf] }
  0x8f   : > { %2532 = vmatprep.mubr.bf16.mxu0 %v3109_v60  ;;  %v1352_v16 = vsel %vm4169_vm5, %v1347_v5, %v1351_v52  ;;  %v1357_v20 = vrot.slane %v1356_v10, 4  ;;  %v3110_v42 = vcombine.low %v1085_v27, %v1088_v38  ;;  %v1369_v43 = vrot.slane %v1367_v33, 5 }
  0x90   : > { %3657 = vmatpush3.bf16.msra.mxu0 %v3859_v22  ;;  %v1383_v48 = vshll.u32 %v3156_v24, 16  ;;  %v888_v50 = vshrl.u32 %v3056_v25, 16  ;;  %v891_v53 = vshll.u32 %v3056_v25, 16  ;;  %v897_v54 = vshll.u32 %v3057_v40, 16  ;;  %v3159_v24 = vld [vmem:[%s4146_s28 + $0x68] sm:$0x1] }
  0x91   : > { %3689 = vmatpush3.bf16.msra.mxu1 %v3859_v22  ;;  %v885_v22 = vrot.slane %v883_v11, 5  ;;  %v1362_v30 = vsel %vm4169_vm5, %v1357_v20, %v1361_v2  ;;  %v1370_v52 = vor.u32 %v1369_v43, %v1366_v39  ;;  %v1379_v57 = vrot.slane %v1377_v47, 4  ;;  %v3157_v2 = vld [vmem:[%s4146_s28 + $0x60] sm:$0xf] }
  0x92   : > { %v3167_v36 = vcombine.low %v1352_v16, %v1362_v30  ;;  %v1385_v58 = vrot.slane %v1383_v48, 5  ;;  %v890_v60 = vrot.slane %v888_v50, 4  ;;  %v901_v59 = vshrl.u32 %v3057_v40, 16  ;;  %v3095_v48 = vld [vmem:[%s4146_s28 + $0x64] sm:$0xf] }
  0x93   : > { %v886_v45 = vsel %vm4169_vm5, %v881_v35, %v885_v22  ;;  %v1371_v62 = vrot.slane %v1370_v52, 4  ;;  %v893_v63 = vrot.slane %v891_v53, 5  ;;  %v899_v0 = vrot.slane %v897_v54, 5  ;;  %v3061_v35 = vld [vmem:[%s4146_s28 + $0x5c] sm:$0x1] }
  0x94   : > { %2629 = vmatprep.mubr.bf16.mxu1 %v3167_v36  ;;  %v3069_v37 = vcombine.low %v876_v41, %v886_v45  ;;  %v907_v1 = vshll.u32 %v3058_v49, 16  ;;  %v1380_v3 = vor.u32 %v1379_v57, %v1375_v44  ;;  %v903_v4 = vrot.slane %v901_v59, 4  ;;  %v3096_v49 = vld [vmem:[%s4146_s28 + $0x68] sm:$0x1]  ;;  %v3160_v54 = vld [vmem:[%s4146_s28 + $0x6c] sm:$0xf] }
  0x95   : > { %2630 = vmatmul.mubr.bf16.gmra.mrb[48].mxu1 %v3852_v32  ;;  %v3103_v5 = vrot.slane %v3091_v55, 9  ;;  %v1091_v6 = vrot.slane %v3092_v56, 5  ;;  %v1376_v8 = vsel %vm4169_vm5, %v1371_v62, %v1375_v44  ;;  %v894_v9 = vor.u32 %v893_v63, %v890_v60  ;;  %v3161_v55 = vld [vmem:[%s4146_s28 + $0x70] sm:$0xf] }
  0x96   : > { %2533 = vmatmul.mubr.bf16.gmra.mrb[48].mxu0 %v3069_v37  ;;  %v909_v10 = vrot.slane %v907_v1, 5  ;;  %v1094_v12 = vrot.slane %v3093_v61, 5  ;;  %v1381_v11 = vrot.slane %v1380_v3, 4  ;;  %v904_v13 = vor.u32 %v903_v4, %v899_v0  ;;  %v3856_v3 = vld [vmem:[%s4146_s28 + $0x60] sm:$0xff]  }
  0x97   : > { %2540 = vmatprep.mubr.bf16.mxu0 %v3110_v42  ;;  %v1092_v14 = vsel %vm4160_vm4, %v3103_v5, %v1091_v6  ;;  %v1093_v16 = vrot.slane %v1091_v6, 4  ;;  %v895_v17 = vrot.slane %v894_v9, 4  ;;  %v1388_v18 = vshrl.u32 %v3157_v2, 16  ;;  %v3094_v42 = vld [vmem:[%s4146_s28 + $0x60] sm:$0xe] }
  0x98   : > { %v1391_v19 = vshll.u32 %v3157_v2, 16  ;;  %v1397_v20 = vshll.u32 %v3158_v7, 16  ;;  %v1386_v21 = vsel %vm4169_vm5, %v1381_v11, %v1385_v58  ;;  %v905_v22 = vrot.slane %v904_v13, 4  ;;  %v3162_v5 = vld [vmem:[%s4146_s28 + $0x74] sm:$0x1] }
  0x99   : > { %v1095_v23 = vsel %vm4160_vm4, %v1093_v16, %v1094_v12  ;;  %v1401_v25 = vshrl.u32 %v3158_v7, 16  ;;  %v3168_v27 = vcombine.low %v1376_v8, %v1386_v21  ;;  %v900_v28 = vsel %vm4169_vm5, %v895_v17, %v899_v0 }
  0x9a   : > { %v3111_v29 = vcombine.low %v1092_v14, %v1095_v23  ;;  %v1390_v30 = vrot.slane %v1388_v18, 4  ;;  %v910_v32 = vsel %vm4169_vm5, %v905_v22, %v909_v10  ;;  %v1393_v33 = vrot.slane %v1391_v19, 5  ;;  %v3062_v18 = vld [vmem:[%s4146_s28 + $0x60] sm:$0xf]  ;;  %v3063_v19 = vld [vmem:[%s4146_s28 + $0x64] sm:$0xf] }
  0x9b   : > { %v1399_v34 = vrot.slane %v1397_v20, 5  ;;  %v1403_v36 = vrot.slane %v1401_v25, 4  ;;  %2637 = vmatprep.mubr.bf16.mxu1 %v3168_v27  ;;  %v3070_v38 = vcombine.low %v900_v28, %v910_v32  ;;  %v1407_v39 = vshll.u32 %v3159_v24, 16  ;;  %v3064_v24 = vld [vmem:[%s4146_s28 + $0x68] sm:$0x1] }
  0x9c   : > { %v912_v40 = vshrl.u32 %v3059_v26, 16  ;;  %v915_v41 = vshll.u32 %v3059_v26, 16  ;;  %v1394_v43 = vor.u32 %v1393_v33, %v1390_v30  ;;  %v921_v45 = vshll.u32 %v3060_v31, 16  ;;  %v3171_v25 = vld [vmem:[%s4146_s28 + $0x18] sm:$0xe] }
  0x9d   : > { %2638 = vmatmul.mubr.bf16.gmra.mrb[52].mxu1 %v3854_v15  ;;  %v1404_v44 = vor.u32 %v1403_v36, %v1399_v34  ;;  %v925_v47 = vshrl.u32 %v3060_v31, 16  ;;  %v1409_v50 = vrot.slane %v1407_v39, 5  ;;  %v931_v53 = vshll.u32 %v3061_v35, 16  ;;  %v3172_v30 = vld [vmem:[%s4146_s28 + $0x1c] sm:$0xf] }
  0x9e   : > { %2541 = vmatmul.mubr.bf16.gmra.mrb[52].mxu0 %v3070_v38  ;;  %v914_v37 = vrot.slane %v912_v40, 4  ;;  %v917_v52 = vrot.slane %v915_v41, 5  ;;  %v1395_v56 = vrot.slane %v1394_v43, 4  ;;  %v923_v58 = vrot.slane %v921_v45, 5  ;;  %v3173_v36 = vld [vmem:[%s4146_s28 + $0x20] sm:$0x1] }
  0x9f   : > { %2548 = vmatprep.mubr.bf16.mxu0 %v3111_v29  ;;  %v1405_v57 = vrot.slane %v1404_v44, 4  ;;  %v927_v60 = vrot.slane %v925_v47, 4  ;;  %v933_v61 = vrot.slane %v931_v53, 5  ;;  %v3104_v62 = vrot.slane %v3094_v42, 9  ;;  %v3183_v41 = vld [vmem:[%s4146_s28 + $0x48] sm:$0xe] }
  0xa0   : > { %v918_v59 = vor.u32 %v917_v52, %v914_v37  ;;  %v1098_v63 = vrot.slane %v3095_v48, 5  ;;  %v1400_v0 = vsel %vm4169_vm5, %v1395_v56, %v1399_v34  ;;  %v1101_v4 = vrot.slane %v3096_v49, 5  ;;  %v3184_v47 = vld [vmem:[%s4146_s28 + $0x4c] sm:$0xf]  ;;  %v3185_v52 = vld [vmem:[%s4146_s28 + $0x50] sm:$0x1] }
  0xa1   : > { %v1410_v1 = vsel %vm4169_vm5, %v1405_v57, %v1409_v50  ;;  %v928_v2 = vor.u32 %v927_v60, %v923_v58  ;;  %v1412_v12 = vshrl.u32 %v3160_v54, 16  ;;  %v1415_v11 = vshll.u32 %v3160_v54, 16  ;;  %v3174_v57 = vld [vmem:[%s4146_s28 + $0x24] sm:$0xe] }
  0xa2   : > { %v3169_v6 = vcombine.low %v1400_v0, %v1410_v1  ;;  %v919_v7 = vrot.slane %v918_v59, 4  ;;  %v1099_v8 = vsel %vm4160_vm4, %v3104_v62, %v1098_v63  ;;  %v1100_v9 = vrot.slane %v1098_v63, 4  ;;  %v3176_v0 = vld [vmem:[%s4146_s28 + $0x2c] sm:$0x1]  ;;  %v3186_v1 = vld [vmem:[%s4146_s28 + $0x54] sm:$0xe] }
  0xa3   : > { %v929_v10 = vrot.slane %v928_v2, 4  ;;  %v1421_v13 = vshll.u32 %v3161_v55, 16  ;;  %v1425_v17 = vshrl.u32 %v3161_v55, 16  ;;  %v1431_v15 = vshll.u32 %v3162_v5, 16 }
  0xa4   : > { %2645 = vmatprep.mubr.bf16.mxu1 %v3169_v6  ;;  %v924_v14 = vsel %vm4169_vm5, %v919_v7, %v923_v58  ;;  %v1102_v16 = vsel %vm4160_vm4, %v1100_v9, %v1101_v4  ;;  %v1414_v22 = vrot.slane %v1412_v12, 4  ;;  %v1417_v23 = vrot.slane %v1415_v11, 5  ;;  %v3175_v58 = vld [vmem:[%s4146_s28 + $0x28] sm:$0xf]  ;;  %v3187_v6 = vld [vmem:[%s4146_s28 + $0x58] sm:$0xf] }
  0xa5   : > { %v934_v20 = vsel %vm4169_vm5, %v929_v10, %v933_v61  ;;  %2646 = vmatmul.mubr.bf16.gmra.mrb[56].mxu1 %v3856_v3  ;;  %v3112_v21 = vcombine.low %v1099_v8, %v1102_v16  ;;  %v1423_v27 = vrot.slane %v1421_v13, 5  ;;  %v1427_v28 = vrot.slane %v1425_v17, 4  ;;  %v3858_v61 = vld [vmem:[%s4146_s28 + $0x6c] sm:$0xff]   ;;  %v3188_v12 = vld [vmem:[%s4146_s28 + $0x5c] sm:$0x1] }
  0xa6   : > { %v3071_v26 = vcombine.low %v924_v14, %v934_v20  ;;  %v1433_v29 = vrot.slane %v1431_v15, 5  ;;  %v1418_v31 = vor.u32 %v1417_v23, %v1414_v22  ;;  %v936_v32 = vshrl.u32 %v3062_v18, 16  ;;  %v3177_v17 = vld [vmem:[%s4146_s28 + $0x30] sm:$0xe]  ;;  %v3178_v15 = vld [vmem:[%s4146_s28 + $0x34] sm:$0xf] }
  0xa7   : > { %v939_v33 = vshll.u32 %v3062_v18, 16  ;;  %v945_v34 = vshll.u32 %v3063_v19, 16  ;;  %v1428_v35 = vor.u32 %v1427_v28, %v1423_v27  ;;  %v949_v38 = vshrl.u32 %v3063_v19, 16  ;;  %v3179_v22 = vld [vmem:[%s4146_s28 + $0x38] sm:$0x1] }
  0xa8   : > { %2549 = vmatmul.mubr.bf16.gmra.mrb[56].mxu0 %v3071_v26  ;;  %v955_v39 = vshll.u32 %v3064_v24, 16  ;;  %v3195_v40 = vrot.slane %v3171_v25, 9  ;;  %v1419_v42 = vrot.slane %v1418_v31, 4  ;;  %v938_v43 = vrot.slane %v936_v32, 4  ;;  %v3189_v23 = vld [vmem:[%s4146_s28 + $0x60] sm:$0xe] }
  0xa9   : > { %2556 = vmatprep.mubr.bf16.mxu0 %v3112_v21  ;;  %v941_v44 = vrot.slane %v939_v33, 5  ;;  %v947_v45 = vrot.slane %v945_v34, 5  ;;  %v1429_v48 = vrot.slane %v1428_v35, 4  ;;  %v951_v49 = vrot.slane %v949_v38, 4  ;;  %v3190_v28 = vld [vmem:[%s4146_s28 + $0x64] sm:$0xf] }
  0xaa   : > { %v957_v50 = vrot.slane %v955_v39, 5  ;;  %v1525_v37 = vrot.slane %v3172_v30, 5  ;;  %v1424_v53 = vsel %vm4169_vm5, %v1419_v42, %v1423_v27  ;;  %v1528_v55 = vrot.slane %v3173_v36, 5  ;;  %v3180_v33 = vld [vmem:[%s4146_s28 + $0x3c] sm:$0xe] }
  0xab   : > { %v942_v54 = vor.u32 %v941_v44, %v938_v43  ;;  %v3199_v56 = vrot.slane %v3183_v41, 9  ;;  %v1434_v60 = vsel %vm4169_vm5, %v1429_v48, %v1433_v29  ;;  %v952_v59 = vor.u32 %v951_v49, %v947_v45  ;;  %v3181_v38 = vld [vmem:[%s4146_s28 + $0x40] sm:$0xf]  ;;  %v3192_v39 = vld [vmem:[%s4146_s28 + $0x6c] sm:$0xe] }
  0xac   : > { %v1526_v62 = vsel %vm4160_vm4, %v3195_v40, %v1525_v37  ;;  %v1527_v63 = vrot.slane %v1525_v37, 4  ;;  %v3170_v2 = vcombine.low %v1424_v53, %v1434_v60  ;;  %v1553_v4 = vrot.slane %v3184_v47, 5  ;;  %v3193_v44 = vld [vmem:[%s4146_s28 + $0x70] sm:$0xf] }
  0xad   : > { %v943_v3 = vrot.slane %v942_v54, 4  ;;  %v1556_v5 = vrot.slane %v3185_v52, 5  ;;  %v953_v7 = vrot.slane %v952_v59, 4  ;;  %v3196_v9 = vrot.slane %v3174_v57, 9 }
  0xae   : > { %v1529_v8 = vsel %vm4160_vm4, %v1527_v63, %v1528_v55  ;;  %v1532_v10 = vrot.slane %v3175_v58, 5  ;;  %2653 = vmatprep.mubr.bf16.mxu1 %v3170_v2  ;;  %v1554_v14 = vsel %vm4160_vm4, %v3199_v56, %v1553_v4  ;;  %v1555_v16 = vrot.slane %v1553_v4, 4  ;;  %v3194_v55 = vld [vmem:[%s4146_s28 + $0x74] sm:$0x1] }
  0xaf   : > { %v948_v11 = vsel %vm4169_vm5, %v943_v3, %v947_v45  ;;  %v3203_v13 = vcombine.low %v1526_v62, %v1529_v8  ;;  %v958_v18 = vsel %vm4169_vm5, %v953_v7, %v957_v50  ;;  %2654 = vmatmul.mubr.bf16.gmra.mrb[60].mxu1 %v3858_v61  ;;  %v1535_v21 = vrot.slane %v3176_v0, 5  ;;  %v3182_v50 = vld [vmem:[%s4146_s28 + $0x44] sm:$0x1]  ;;  %s3864_s28 = sshll.u32 %s3956_s6, 4  ;;  %s3865_s28 = int_to_ptr.vmem [resolvable:$false] %s3864_s28 }
  0xb0   : > { %v1533_v19 = vsel %vm4160_vm4, %v3196_v9, %v1532_v10  ;;  %v1534_v20 = vrot.slane %v1532_v10, 4  ;;  %v3072_v24 = vcombine.low %v948_v11, %v958_v18  ;;  %v1557_v25 = vsel %vm4160_vm4, %v1555_v16, %v1556_v5  ;;  %v4679_v11 = vld [vmem:[%s4851_s2] ss:$0 sm:$0xff]  ;;  %s3866_s7 = scalar_lea.vmem %s3865_s28, 2048  ;;  %p3867_p2 = scmp.lt.s32.totalorder %s4791_s27, %s3865_s28 }
  0xb1   : > { %v3200_v26 = vrot.slane %v3186_v1, 9  ;;  %v1560_v27 = vrot.slane %v3187_v6, 5  ;;  %v3207_v29 = vcombine.low %v1554_v14, %v1557_v25  ;;  %v1563_v31 = vrot.slane %v3188_v12, 5  ;;  %p3868_p4 = scmp.lt.s32.totalorder %s3866_s7, %s3860_s29 }
  0xb2   : > { %v1536_v30 = vsel %vm4160_vm4, %v1534_v20, %v1535_v21  ;;  %v3197_v32 = vrot.slane %v3177_v17, 9  ;;  %2557 = vmatmul.mubr.bf16.gmra.mrb[60].mxu0 %v3072_v24  ;;  %v1539_v35 = vrot.slane %v3178_v15, 5  ;;  %v1542_v40 = vrot.slane %v3179_v22, 5 }
  0xb3   : > { %v1561_v34 = vsel %vm4160_vm4, %v3200_v26, %v1560_v27  ;;  %v1562_v36 = vrot.slane %v1560_v27, 4  ;;  %3658 = vmatprep.mubr.bf16.mxu0 %v3203_v13  ;;  %3666 = vmatprep.mubr.bf16.mxu1 %v3207_v29  ;;  %v3201_v41 = vrot.slane %v3189_v23, 9  ;;  %v1567_v42 = vrot.slane %v3190_v28, 5  ;;  %p3869_p5 = por %p3868_p4, %p3867_p2 }
  0xb4   : > { %v1570_v43 = vrot.slane %v3191_v51, 5  ;;  %v3204_v45 = vcombine.low %v1533_v19, %v1536_v30  ;;  %v1540_v48 = vsel %vm4160_vm4, %v3197_v32, %v1539_v35  ;;  %v1541_v49 = vrot.slane %v1539_v35, 4 }
  0xb5   : > { %v1564_v47 = vsel %vm4160_vm4, %v1562_v36, %v1563_v31  ;;  %v1568_v52 = vsel %vm4160_vm4, %v3201_v41, %v1567_v42  ;;  %v1569_v53 = vrot.slane %v1567_v42, 4  ;;  %v1546_v54 = vrot.slane %v3181_v38, 5  ;;  %p3870_p6 = pnand %p3869_p5, %p3863_p1 }
  0xb6   : > { %v3208_v37 = vcombine.low %v1561_v34, %v1564_v47  ;;  %v1543_v56 = vsel %vm4160_vm4, %v1541_v49, %v1542_v40  ;;  %v3198_v57 = vrot.slane %v3180_v33, 9  ;;  %v3202_v58 = vrot.slane %v3192_v39, 9 }
  0xb7   : > { %v1574_v60 = vrot.slane %v3193_v44, 5  ;;  %v3205_v59 = vcombine.low %v1540_v48, %v1543_v56  ;;  %v1571_v61 = vsel %vm4160_vm4, %v1569_v53, %v1570_v43  ;;  %v1548_v62 = vrot.slane %v1546_v54, 4 }
  0xb8   : > { %3667 = vmatmul.mubr.bf16.vlgmr.msra.gmra.mrb[64].mxu1 %v3208_v37  ;;  %v1549_v63 = vrot.slane %v3182_v50, 5  ;;  %v3209_v0 = vcombine.low %v1568_v52, %v1571_v61  ;;  %v1577_v3 = vrot.slane %v3194_v55, 5  ;;  %v1547_v5 = vsel %vm4160_vm4, %v3198_v57, %v1546_v54 }
  0xb9   : > { %v1575_v1 = vsel %vm4160_vm4, %v3202_v58, %v1574_v60  ;;  %v1576_v2 = vrot.slane %v1574_v60, 4 }
  0xba   : > { %3659 = vmatmul.mubr.bf16.vlgmr.msra.gmra.mrb[64].mxu0 %v3204_v45  ;;  %3670 = vmatprep.mubr.bf16.mxu1 %v3209_v0  ;;  %v1550_v6 = vsel %vm4160_vm4, %v1548_v62, %v1549_v63 }
  0xbb   : > { %v1578_v4 = vsel %vm4160_vm4, %v1576_v2, %v1577_v3  ;;  %3662 = vmatprep.mubr.bf16.mxu0 %v3205_v59  ;;  %v3206_v8 = vcombine.low %v1547_v5, %v1550_v6 }
  0xbc   : > { %v3210_v7 = vcombine.low %v1575_v1, %v1578_v4 }
  0xc0   : > { %3671 = vmatmul.mubr.bf16.gmra.mrb[68].mxu1 %v3210_v7 }
  0xc2   : > { %3663 = vmatmul.mubr.bf16.gmra.mrb[68].mxu0 %v3206_v8 }
 0x106   : > { %v3386_v10 = vpop.f32.mrb[0].mxu0 }
 0x107   : > { %v3450_v9 = vpop.f32.mrb[0].mxu1  ;;  %v3387_v13 = vpop.f32.mrb[1].mxu0 }
 0x108   : > { %v3451_v12 = vpop.f32.mrb[1].mxu1  ;;  %v3388_v17 = vadd.f32 %v3387_v13, %v3386_v10  ;;  %v3389_v15 = vpop.f32.mrb[2].mxu0 }
 0x109   : > { %v3452_v14 = vadd.f32 %v3451_v12, %v3450_v9  ;;  %v3453_v16 = vpop.f32.mrb[2].mxu1  ;;  %v3390_v46 = vpop.f32.mrb[3].mxu0 }
 0x10a   : > { %v3454_v18 = vpop.f32.mrb[3].mxu1  ;;  %v2309_v20 = vadd.f32 %v3388_v17, %v4679_v11  ;;  %v3391_v21 = vadd.f32 %v3390_v46, %v3389_v15 }
 0x10b   : > { %v3455_v19 = vadd.f32 %v3454_v18, %v3453_v16 }
 0x10c   : > { %v4682_v22 = vadd.f32 %v3452_v14, %v2309_v20  ;;  %v2312_v23 = vadd.f32 %v3391_v21, %v4679_v11 }
 0x10e   : > { %v4685_v24 = vadd.f32 %v3455_v19, %v2312_v23  ;;  %v3392_v26 = vpop.f32.mrb[4].mxu0 }
 0x10f   : > { %v3456_v25 = vpop.f32.mrb[4].mxu1  ;;  %v3393_v28 = vpop.f32.mrb[5].mxu0 }
 0x110   : > { %v3457_v27 = vpop.f32.mrb[5].mxu1  ;;  %v3394_v30 = vadd.f32 %v3393_v28, %v3392_v26  ;;  %v3395_v31 = vpop.f32.mrb[6].mxu0 }
 0x111   : > { %v3458_v51 = vadd.f32 %v3457_v27, %v3456_v25  ;;  %v3459_v29 = vpop.f32.mrb[6].mxu1  ;;  %v3396_v33 = vpop.f32.mrb[7].mxu0 }
 0x112   : > { %v3460_v32 = vpop.f32.mrb[7].mxu1  ;;  %v2317_v36 = vadd.f32 %v3394_v30, %v4679_v11  ;;  %v3397_v35 = vadd.f32 %v3396_v33, %v3395_v31 }
 0x113   : > { %v3461_v34 = vadd.f32 %v3460_v32, %v3459_v29 }
 0x114   : > { %v4688_v38 = vadd.f32 %v3458_v51, %v2317_v36  ;;  %v2320_v39 = vadd.f32 %v3397_v35, %v4679_v11 }
 0x116   : > { %v4691_v40 = vadd.f32 %v3461_v34, %v2320_v39  ;;  %v3398_v42 = vpop.f32.mrb[8].mxu0 }
 0x117   : > { %v3462_v41 = vpop.f32.mrb[8].mxu1  ;;  %v3399_v44 = vpop.f32.mrb[9].mxu0 }
 0x118   : > { %v3463_v43 = vpop.f32.mrb[9].mxu1  ;;  %v3400_v48 = vadd.f32 %v3399_v44, %v3398_v42  ;;  %v3401_v49 = vpop.f32.mrb[10].mxu0 }
 0x119   : > { %v3464_v45 = vadd.f32 %v3463_v43, %v3462_v41  ;;  %v3465_v47 = vpop.f32.mrb[10].mxu1  ;;  %v3402_v37 = vpop.f32.mrb[11].mxu0 }
 0x11a   : > { %v3466_v50 = vpop.f32.mrb[11].mxu1  ;;  %v2325_v53 = vadd.f32 %v3400_v48, %v4679_v11  ;;  %v3403_v54 = vadd.f32 %v3402_v37, %v3401_v49 }
 0x11b   : > { %v3467_v52 = vadd.f32 %v3466_v50, %v3465_v47 }
 0x11c   : > { %v4694_v55 = vadd.f32 %v3464_v45, %v2325_v53  ;;  %v2328_v56 = vadd.f32 %v3403_v54, %v4679_v11 }
 0x11e   : > { %v4697_v57 = vadd.f32 %v3467_v52, %v2328_v56  ;;  %v3404_v60 = vpop.f32.mrb[12].mxu0 }
 0x11f   : > { %v3468_v58 = vpop.f32.mrb[12].mxu1  ;;  %v3405_v61 = vpop.f32.mrb[13].mxu0 }
 0x120   : > { %v3469_v59 = vpop.f32.mrb[13].mxu1  ;;  %v3406_v0 = vadd.f32 %v3405_v61, %v3404_v60  ;;  %v3407_v1 = vpop.f32.mrb[14].mxu0 }
 0x121   : > { %v3470_v62 = vadd.f32 %v3469_v59, %v3468_v58  ;;  %v3471_v63 = vpop.f32.mrb[14].mxu1  ;;  %v3408_v3 = vpop.f32.mrb[15].mxu0 }
 0x122   : > { %v3472_v2 = vpop.f32.mrb[15].mxu1  ;;  %v2333_v5 = vadd.f32 %v3406_v0, %v4679_v11  ;;  %v3409_v6 = vadd.f32 %v3408_v3, %v3407_v1 }
 0x123   : > { %v3473_v4 = vadd.f32 %v3472_v2, %v3471_v63 }
 0x124   : > { %v4700_v7 = vadd.f32 %v3470_v62, %v2333_v5  ;;  %v2336_v8 = vadd.f32 %v3409_v6, %v4679_v11 }
 0x126   : > { %v4703_v9 = vadd.f32 %v3473_v4, %v2336_v8  ;;  %v3410_v12 = vpop.f32.mrb[16].mxu0 }
 0x127   : > { %v3474_v10 = vpop.f32.mrb[16].mxu1  ;;  %v3411_v14 = vpop.f32.mrb[17].mxu0 }
 0x128   : > { %v3475_v13 = vpop.f32.mrb[17].mxu1  ;;  %v3412_v15 = vadd.f32 %v3411_v14, %v3410_v12  ;;  %v3413_v18 = vpop.f32.mrb[18].mxu0 }
 0x129   : > { %v3476_v16 = vadd.f32 %v3475_v13, %v3474_v10  ;;  %v3477_v17 = vpop.f32.mrb[18].mxu1  ;;  %v3414_v19 = vpop.f32.mrb[19].mxu0 }
 0x12a   : > { %v3478_v46 = vpop.f32.mrb[19].mxu1  ;;  %v2341_v21 = vadd.f32 %v3412_v15, %v4679_v11  ;;  %v3415_v23 = vadd.f32 %v3414_v19, %v3413_v18 }
 0x12b   : > { %v3479_v20 = vadd.f32 %v3478_v46, %v3477_v17 }
 0x12c   : > { %v4706_v25 = vadd.f32 %v3476_v16, %v2341_v21  ;;  %v2344_v26 = vadd.f32 %v3415_v23, %v4679_v11 }
 0x12e   : > { %v4709_v27 = vadd.f32 %v3479_v20, %v2344_v26  ;;  %v3416_v51 = vpop.f32.mrb[20].mxu0 }
 0x12f   : > { %v3480_v28 = vpop.f32.mrb[20].mxu1  ;;  %v3417_v30 = vpop.f32.mrb[21].mxu0 }
 0x130   : > { %v3481_v29 = vpop.f32.mrb[21].mxu1  ;;  %v3418_v33 = vadd.f32 %v3417_v30, %v3416_v51  ;;  %v3419_v34 = vpop.f32.mrb[22].mxu0 }
 0x131   : > { %v3482_v31 = vadd.f32 %v3481_v29, %v3480_v28  ;;  %v3483_v32 = vpop.f32.mrb[22].mxu1  ;;  %v3420_v35 = vpop.f32.mrb[23].mxu0 }
 0x132   : > { %v3484_v36 = vpop.f32.mrb[23].mxu1  ;;  %v2349_v41 = vadd.f32 %v3418_v33, %v4679_v11  ;;  %v3421_v42 = vadd.f32 %v3420_v35, %v3419_v34 }
 0x133   : > { %v3485_v39 = vadd.f32 %v3484_v36, %v3483_v32 }
 0x134   : > { %v4712_v43 = vadd.f32 %v3482_v31, %v2349_v41  ;;  %v2352_v44 = vadd.f32 %v3421_v42, %v4679_v11 }
 0x136   : > { %v4715_v45 = vadd.f32 %v3485_v39, %v2352_v44  ;;  %v3422_v48 = vpop.f32.mrb[24].mxu0 }
 0x137   : > { %v3486_v47 = vpop.f32.mrb[24].mxu1  ;;  %v3423_v50 = vpop.f32.mrb[25].mxu0 }
 0x138   : > { %v3487_v49 = vpop.f32.mrb[25].mxu1  ;;  %v3424_v53 = vadd.f32 %v3423_v50, %v3422_v48  ;;  %v3425_v54 = vpop.f32.mrb[26].mxu0 }
 0x139   : > { %v3488_v37 = vadd.f32 %v3487_v49, %v3486_v47  ;;  %v3489_v52 = vpop.f32.mrb[26].mxu1  ;;  %v3426_v58 = vpop.f32.mrb[27].mxu0 }
 0x13a   : > { %v3490_v56 = vpop.f32.mrb[27].mxu1  ;;  %v2357_v59 = vadd.f32 %v3424_v53, %v4679_v11  ;;  %v3427_v61 = vadd.f32 %v3426_v58, %v3425_v54 }
 0x13b   : > { %v3491_v60 = vadd.f32 %v3490_v56, %v3489_v52 }
 0x13c   : > { %v4718_v62 = vadd.f32 %v3488_v37, %v2357_v59  ;;  %v2360_v63 = vadd.f32 %v3427_v61, %v4679_v11 }
 0x13e   : > { %v4721_v0 = vadd.f32 %v3491_v60, %v2360_v63  ;;  %v3428_v2 = vpop.f32.mrb[28].mxu0 }
 0x13f   : > { %v3492_v1 = vpop.f32.mrb[28].mxu1  ;;  %v3429_v4 = vpop.f32.mrb[29].mxu0 }
 0x140   : > { %v3493_v3 = vpop.f32.mrb[29].mxu1  ;;  %v3430_v8 = vadd.f32 %v3429_v4, %v3428_v2  ;;  %v3431_v10 = vpop.f32.mrb[30].mxu0 }
 0x141   : > { %v3494_v5 = vadd.f32 %v3493_v3, %v3492_v1  ;;  %v3495_v6 = vpop.f32.mrb[30].mxu1  ;;  %v3432_v13 = vpop.f32.mrb[31].mxu0 }
 0x142   : > { %v3496_v12 = vpop.f32.mrb[31].mxu1  ;;  %v2365_v16 = vadd.f32 %v3430_v8, %v4679_v11  ;;  %v3433_v17 = vadd.f32 %v3432_v13, %v3431_v10 }
 0x143   : > { %v3497_v14 = vadd.f32 %v3496_v12, %v3495_v6 }
 0x144   : > { %v4724_v15 = vadd.f32 %v3494_v5, %v2365_v16  ;;  %v2368_v18 = vadd.f32 %v3433_v17, %v4679_v11 }
 0x146   : > { %v4727_v46 = vadd.f32 %v3497_v14, %v2368_v18  ;;  %v3514_v28 = vpop.f32.mrb[32].mxu0 }
 0x147   : > { %v3578_v19 = vpop.f32.mrb[32].mxu1  ;;  %v3515_v29 = vpop.f32.mrb[33].mxu0 }
 0x148   : > { %v3579_v20 = vpop.f32.mrb[33].mxu1  ;;  %v3516_v30 = vadd.f32 %v3515_v29, %v3514_v28  ;;  %v3517_v31 = vpop.f32.mrb[34].mxu0 }
 0x149   : > { %v3580_v21 = vadd.f32 %v3579_v20, %v3578_v19  ;;  %v3581_v23 = vpop.f32.mrb[34].mxu1  ;;  %v3518_v32 = vpop.f32.mrb[35].mxu0 }
 0x14a   : > { %v3582_v26 = vpop.f32.mrb[35].mxu1  ;;  %v2503_v33 = vadd.f32 %v3516_v30, %v4682_v22  ;;  %v3519_v34 = vadd.f32 %v3518_v32, %v3517_v31 }
 0x14b   : > { %v3583_v51 = vadd.f32 %v3582_v26, %v3581_v23 }
 0x14c   : > { %v2506_v36 = vadd.f32 %v3519_v34, %v4685_v24  ;;  %v4731_v35 = vadd.f32 %v3580_v21, %v2503_v33 }
 0x14e   : > { %v4733_v41 = vadd.f32 %v3583_v51, %v2506_v36 }
 0x14f   : > { %v3584_v11 = vpop.f32.mrb[36].mxu1 }
 0x150   : > { %v3585_v39 = vpop.f32.mrb[37].mxu1  ;;  %v3520_v47 = vpop.f32.mrb[36].mxu0 }
 0x151   : > { %v3586_v42 = vadd.f32 %v3585_v39, %v3584_v11  ;;  %v3587_v44 = vpop.f32.mrb[38].mxu1  ;;  %v3521_v49 = vpop.f32.mrb[37].mxu0 }
 0x152   : > { %v3588_v48 = vpop.f32.mrb[39].mxu1  ;;  %v3522_v37 = vadd.f32 %v3521_v49, %v3520_v47  ;;  %v3523_v52 = vpop.f32.mrb[38].mxu0 }
 0x153   : > { %v3589_v50 = vadd.f32 %v3588_v48, %v3587_v44  ;;  %v3524_v53 = vpop.f32.mrb[39].mxu0 }
 0x154   : > { %v2511_v22 = vadd.f32 %v3522_v37, %v4688_v38  ;;  %v3525_v54 = vadd.f32 %v3524_v53, %v3523_v52 }
 0x156   : > { %v2514_v24 = vadd.f32 %v3525_v54, %v4691_v40  ;;  %v4737_v56 = vadd.f32 %v3586_v42, %v2511_v22 }
 0x157   : > { %v3590_v58 = vpop.f32.mrb[40].mxu1 }
 0x158   : > { %v4739_v60 = vadd.f32 %v3589_v50, %v2514_v24  ;;  %v3591_v59 = vpop.f32.mrb[41].mxu1 }
 0x159   : > { %v3526_v61 = vpop.f32.mrb[40].mxu0  ;;  %v3592_v63 = vadd.f32 %v3591_v59, %v3590_v58  ;;  %v3593_v1 = vpop.f32.mrb[42].mxu1 }
 0x15a   : > { %v3527_v2 = vpop.f32.mrb[41].mxu0  ;;  %v3594_v3 = vpop.f32.mrb[43].mxu1 }
 0x15b   : > { %v3528_v4 = vadd.f32 %v3527_v2, %v3526_v61  ;;  %v3529_v5 = vpop.f32.mrb[42].mxu0  ;;  %v3595_v6 = vadd.f32 %v3594_v3, %v3593_v1 }
 0x15c   : > { %v3530_v8 = vpop.f32.mrb[43].mxu0 }
 0x15d   : > { %v2519_v38 = vadd.f32 %v3528_v4, %v4694_v55  ;;  %v3531_v10 = vadd.f32 %v3530_v8, %v3529_v5 }
 0x15f   : > { %v2522_v40 = vadd.f32 %v3531_v10, %v4697_v57  ;;  %v4743_v12 = vadd.f32 %v3592_v63, %v2519_v38  ;;  %v3596_v13 = vpop.f32.mrb[44].mxu1 }
 0x160   : > { %v3597_v16 = vpop.f32.mrb[45].mxu1 }
 0x161   : > { %v4745_v14 = vadd.f32 %v3595_v6, %v2522_v40  ;;  %v3598_v17 = vadd.f32 %v3597_v16, %v3596_v13  ;;  %v3599_v18 = vpop.f32.mrb[46].mxu1  ;;  %v3532_v19 = vpop.f32.mrb[44].mxu0 }
 0x162   : > { %v3600_v20 = vpop.f32.mrb[47].mxu1  ;;  %v3533_v21 = vpop.f32.mrb[45].mxu0 }
 0x163   : > { %v3601_v23 = vadd.f32 %v3600_v20, %v3599_v18  ;;  %v3534_v26 = vadd.f32 %v3533_v21, %v3532_v19  ;;  %v3535_v28 = vpop.f32.mrb[46].mxu0 }
 0x164   : > { %v3536_v51 = vpop.f32.mrb[47].mxu0 }
 0x165   : > { %v2527_v55 = vadd.f32 %v3534_v26, %v4700_v7  ;;  %v3537_v29 = vadd.f32 %v3536_v51, %v3535_v28 }
 0x167   : > { %v2530_v57 = vadd.f32 %v3537_v29, %v4703_v9  ;;  %v4749_v30 = vadd.f32 %v3598_v17, %v2527_v55 }
 0x168   : > { %v3602_v31 = vpop.f32.mrb[48].mxu1 }
 0x169   : > { %v4751_v32 = vadd.f32 %v3601_v23, %v2530_v57  ;;  %v3603_v33 = vpop.f32.mrb[49].mxu1  ;;  %v3538_v34 = vpop.f32.mrb[48].mxu0 }
 0x16a   : > { %v3604_v36 = vadd.f32 %v3603_v33, %v3602_v31  ;;  %v3605_v11 = vpop.f32.mrb[50].mxu1  ;;  %v3539_v39 = vpop.f32.mrb[49].mxu0 }
 0x16b   : > { %v3606_v42 = vpop.f32.mrb[51].mxu1  ;;  %v3540_v44 = vadd.f32 %v3539_v39, %v3538_v34  ;;  %v3541_v47 = vpop.f32.mrb[50].mxu0 }
 0x16c   : > { %v3607_v48 = vadd.f32 %v3606_v42, %v3605_v11  ;;  %v3542_v49 = vpop.f32.mrb[51].mxu0 }
 0x16d   : > { %v2535_v7 = vadd.f32 %v3540_v44, %v4706_v25  ;;  %v3543_v50 = vadd.f32 %v3542_v49, %v3541_v47 }
 0x16f   : > { %v2538_v9 = vadd.f32 %v3543_v50, %v4709_v27  ;;  %v2632_v37 = vadd.f32 %v3604_v36, %v2535_v7 }
 0x170   : > { %v3608_v53 = vpop.f32.mrb[52].mxu1 }
 0x171   : > { %v2635_v52 = vadd.f32 %v3607_v48, %v2538_v9  ;;  %v3544_v22 = vpop.f32.mrb[52].mxu0  ;;  %v3609_v54 = vpop.f32.mrb[53].mxu1 }
 0x172   : > { %v3545_v24 = vpop.f32.mrb[53].mxu0  ;;  %v3610_v58 = vadd.f32 %v3609_v54, %v3608_v53  ;;  %v3611_v59 = vpop.f32.mrb[54].mxu1 }
 0x173   : > { %v3546_v61 = vadd.f32 %v3545_v24, %v3544_v22  ;;  %v3547_v63 = vpop.f32.mrb[54].mxu0  ;;  %v3612_v1 = vpop.f32.mrb[55].mxu1 }
 0x174   : > { %v3548_v2 = vpop.f32.mrb[55].mxu0  ;;  %v3613_v3 = vadd.f32 %v3612_v1, %v3611_v59 }
 0x175   : > { %v2543_v4 = vadd.f32 %v3546_v61, %v4712_v43  ;;  %v3549_v5 = vadd.f32 %v3548_v2, %v3547_v63 }
 0x177   : > { %v2546_v25 = vadd.f32 %v3549_v5, %v4715_v45  ;;  %v2640_v6 = vadd.f32 %v3610_v58, %v2543_v4 }
 0x178   : > { %v3614_v27 = vpop.f32.mrb[56].mxu1 }
 0x179   : > { %v3615_v8 = vpop.f32.mrb[57].mxu1  ;;  %v2643_v38 = vadd.f32 %v3613_v3, %v2546_v25 }
 0x17a   : > { %v3616_v10 = vadd.f32 %v3615_v8, %v3614_v27  ;;  %v3617_v40 = vpop.f32.mrb[58].mxu1 }
 0x17b   : > { %v3550_v13 = vpop.f32.mrb[56].mxu0  ;;  %v3618_v16 = vpop.f32.mrb[59].mxu1 }
 0x17c   : > { %v3551_v17 = vpop.f32.mrb[57].mxu0  ;;  %v3619_v18 = vadd.f32 %v3618_v16, %v3617_v40 }
 0x17d   : > { %v3552_v19 = vadd.f32 %v3551_v17, %v3550_v13  ;;  %v3553_v20 = vpop.f32.mrb[58].mxu0 }
 0x17e   : > { %v3554_v21 = vpop.f32.mrb[59].mxu0 }
 0x17f   : > { %v2551_v23 = vadd.f32 %v3552_v19, %v4718_v62  ;;  %v3555_v26 = vadd.f32 %v3554_v21, %v3553_v20 }
 0x181   : > { %v2554_v43 = vadd.f32 %v3555_v26, %v4721_v0  ;;  %v2648_v28 = vadd.f32 %v3616_v10, %v2551_v23 }
 0x182   : > { %v3620_v45 = vpop.f32.mrb[60].mxu1 }
 0x183   : > { %v4759_v51 = vadd.f32 %v3619_v18, %v2554_v43  ;;  %v3621_v55 = vpop.f32.mrb[61].mxu1 }
 0x184   : > { %v3622_v29 = vadd.f32 %v3621_v55, %v3620_v45  ;;  %v3623_v57 = vpop.f32.mrb[62].mxu1 }
 0x185   : > { %v3556_v31 = vpop.f32.mrb[60].mxu0  ;;  %v3624_v33 = vpop.f32.mrb[63].mxu1 }
 0x186   : > { %v3557_v34 = vpop.f32.mrb[61].mxu0  ;;  %v3625_v36 = vadd.f32 %v3624_v33, %v3623_v57 }
 0x187   : > { %v3558_v11 = vadd.f32 %v3557_v34, %v3556_v31  ;;  %v3559_v39 = vpop.f32.mrb[62].mxu0 }
 0x188   : > { %v3560_v42 = vpop.f32.mrb[63].mxu0 }
 0x189   : > { %v2559_v62 = vadd.f32 %v3558_v11, %v4724_v15  ;;  %v3561_v44 = vadd.f32 %v3560_v42, %v3559_v39 }
 0x18b   : > { %v3668_v47 = vpop.f32.mrb[64].mxu1  ;;  %v2562_v0 = vadd.f32 %v3561_v44, %v4727_v46  ;;  %v2656_v7 = vadd.f32 %v3622_v29, %v2559_v62 }
 0x18c   : > { %v2737_v48 = vadd.f32 %v3668_v47, %v2640_v6  ;;  %v2728_v49 = vpop.f32.mrb[65].mxu1 }
 0x18d   : > { %v2729_v50 = vadd.f32 %v2728_v49, %v2632_v37  ;;  %v3669_v9 = vpop.f32.mrb[66].mxu1  ;;  %v3660_v53 = vpop.f32.mrb[64].mxu0  ;;  %v2659_v58 = vadd.f32 %v3625_v36, %v2562_v0 }
 0x18e   : > { %v2769_v22 = vmul.f32 0.1, %v2737_v48  ;;  %v2740_v54 = vadd.f32 %v3669_v9, %v2643_v38  ;;  %v2731_v24 = vpop.f32.mrb[67].mxu1  ;;  %v2705_v59 = vadd.f32 %v3660_v53, %v4737_v56  ;;  %v2696_v61 = vpop.f32.mrb[65].mxu0 }
 0x18f   : > { %v2767_v15 = vmul.f32 0.1, %v2729_v50  ;;  %v2732_v63 = vadd.f32 %v2731_v24, %v2635_v52  ;;  %v2697_v1 = vadd.f32 %v2696_v61, %v4731_v35  ;;  %v3661_v46 = vpop.f32.mrb[66].mxu0 }
 0x190   : > { %v2770_v2 = vmul.f32 0.1, %v2740_v54  ;;  %v2761_v3 = vmul.f32 0.1, %v2705_v59  ;;  %v2708_v37 = vadd.f32 %v3661_v46, %v4739_v60  ;;  %v2699_v4 = vpop.f32.mrb[67].mxu0  ;;  %v2785_v25 = vmax.f32 %v2737_v48, %v2769_v22 }
 0x191   : > { %v2768_v5 = vmul.f32 0.1, %v2732_v63  ;;  %v2759_v6 = vmul.f32 0.1, %v2697_v1  ;;  %v2700_v8 = vadd.f32 %v2699_v4, %v4733_v41  ;;  %v2783_v56 = vmax.f32 %v2729_v50, %v2767_v15 }
 0x192   : > { %v2786_v27 = vmax.f32 %v2740_v54, %v2770_v2  ;;  %v2762_v38 = vmul.f32 0.1, %v2708_v37  ;;  %v2777_v17 = vmax.f32 %v2705_v59, %v2761_v3 }
 0x193   : > { %v2784_v10 = vmax.f32 %v2732_v63, %v2768_v5  ;;  %v3672_v52 = vpop.f32.mrb[68].mxu1  ;;  %v2760_v35 = vmul.f32 0.1, %v2700_v8  ;;  %v2775_v21 = vmax.f32 %v2697_v1, %v2759_v6 }
 0x194   : > { %v3351_v40 = vpack.c.bf16 %v2786_v27, %v2785_v25  ;;  %v2753_v13 = vadd.f32 %v3672_v52, %v2656_v7  ;;  %v2744_v16 = vpop.f32.mrb[69].mxu1  ;;  %v2778_v18 = vmax.f32 %v2708_v37, %v2762_v38 }
 0x195   : > { %v3346_v60 = vpack.c.bf16 %v2784_v10, %v2783_v56  ;;  %v2745_v19 = vadd.f32 %v2744_v16, %v2648_v28  ;;  %v3673_v20 = vpop.f32.mrb[70].mxu1  ;;  %v2776_v41 = vmax.f32 %v2700_v8, %v2760_v35  ;;  %v3664_v23 = vpop.f32.mrb[68].mxu0 }
 0x196   : > { %3367 = vst [vmem:[%s4770_s11 + $0x28] sm:$0xff] %v3351_v40   ;;  %v2773_v26 = vmul.f32 0.1, %v2753_v13  ;;  %v2756_v43 = vadd.f32 %v3673_v20, %v2659_v58  ;;  %v2747_v45 = vpop.f32.mrb[71].mxu1  ;;  %v3331_v55 = vpack.c.bf16 %v2778_v18, %v2777_v17  ;;  %v2721_v28 = vadd.f32 %v3664_v23, %v4749_v30  ;;  %v2712_v29 = vpop.f32.mrb[69].mxu0 }
 0x197   : > { %3366 = vst [vmem:[%s4770_s11 + $0x20] sm:$0xff] %v3346_v60   ;;  %v2771_v57 = vmul.f32 0.1, %v2745_v19  ;;  %v2748_v31 = vadd.f32 %v2747_v45, %v4759_v51  ;;  %v3326_v33 = vpack.c.bf16 %v2776_v41, %v2775_v21  ;;  %v2713_v34 = vadd.f32 %v2712_v29, %v4743_v12  ;;  %v3665_v36 = vpop.f32.mrb[70].mxu0 }
 0x198   : > { %v2774_v11 = vmul.f32 0.1, %v2756_v43  ;;  %3363 = vst [vmem:[%s4770_s11 + $0x8] sm:$0xff] %v3331_v55   ;;  %v2765_v39 = vmul.f32 0.1, %v2721_v28  ;;  %v2724_v42 = vadd.f32 %v3665_v36, %v4751_v32  ;;  %v2715_v62 = vpop.f32.mrb[71].mxu0  ;;  %v2789_v30 = vmax.f32 %v2753_v13, %v2773_v26 }
 0x199   : > { %v2772_v44 = vmul.f32 0.1, %v2748_v31  ;;  %3327 = vst [vmem:[%s4770_s11] sm:$0xff] %v3326_v33   ;;  %v2763_v47 = vmul.f32 0.1, %v2713_v34  ;;  %v2716_v51 = vadd.f32 %v2715_v62, %v4745_v14  ;;  %v2787_v48 = vmax.f32 %v2745_v19, %v2771_v57 }
 0x19a   : > { %v2790_v0 = vmax.f32 %v2756_v43, %v2774_v11  ;;  %v2766_v12 = vmul.f32 0.1, %v2724_v42  ;;  %v2781_v32 = vmax.f32 %v2721_v28, %v2765_v39 }
 0x19b   : > { %v2788_v49 = vmax.f32 %v2748_v31, %v2772_v44  ;;  %v2764_v50 = vmul.f32 0.1, %v2716_v51  ;;  %v2779_v22 = vmax.f32 %v2713_v34, %v2763_v47 }
 0x19c   : > { %v3361_v7 = vpack.c.bf16 %v2790_v0, %v2789_v30  ;;  %v2782_v9 = vmax.f32 %v2724_v42, %v2766_v12 }
 0x19d   : > { %v3356_v53 = vpack.c.bf16 %v2788_v49, %v2787_v48  ;;  %v2780_v54 = vmax.f32 %v2716_v51, %v2764_v50 }
 0x19e   : > { %3369 = vst [vmem:[%s4770_s11 + $0x38] sm:$0xff] %v3361_v7   ;;  %v3341_v24 = vpack.c.bf16 %v2782_v9, %v2781_v32 }
 0x19f   : > { %3368 = vst [vmem:[%s4770_s11 + $0x30] sm:$0xff] %v3356_v53   ;;  %v3336_v14 = vpack.c.bf16 %v2780_v54, %v2779_v22 }
 0x1a0   : > { %3365 = vst [vmem:[%s4770_s11 + $0x18] sm:$0xff] %v3341_v24  }
 0x1a1   : > { %3364 = vst [vmem:[%s4770_s11 + $0x10] sm:$0xff] %v3336_v14  }
 0x1a2   : > { %3873 = shalt.err (!%p3870_p6)
}
 0x1a3   : > { %s3874_s8 = scalar_lea.hbm %s4789_s5, 1024  ;;  %s3878_s20 = scalar_lea.hbm %s4852_s3, 4096 }
 0x1a4   : > { %p3875_p7 = scmp.ne.s32.totalorder %s4789_s5, %s3874_s8  ;;  %p3879_p11 = scmp.lt.u32.totalorder %s4789_s5, %s4852_s3 }
 0x1a5   : > { %p3880_p12 = scmp.lt.u32.totalorder %s3878_s20, %s3874_s8  ;;  %p3882_p0 = scmp.lt.u32.totalorder %s3874_s8, %s4789_s5 }
 0x1a6   : > { %p3876_p9 = pnand %p3875_p7, %p4030_p3 }
 0x1a7   : > { %p3881_p13 = por %p3880_p12, %p3879_p11 }
 0x1a8   : > { %p3877_p10 = pneg %p3876_p9 }
 0x1a9   : > { %p3883_p1 = por %p3882_p0, %p3881_p13 }
 0x1ab   : > { %p3884_p2 = pnand %p3883_p1, %p3877_p10 }
 0x1ad   : > { %3887 = shalt.err (!%p3884_p2)
}
 0x1ae   : > { %s3957_s16 = smov 64   ;;  %s3958_s9 = smov 4  }
 0x1af   : > { %3691 = dma.vmem_to_hbm [thread:$0]  (%p4030_p3), %s4791_s27, 1024, %s4789_s5, %s4797_s24, %s3957_s16, %s3957_s16, %s3958_s9  }
 0x1b0 PF: > { %p3697_p4 = scmp.ge.s32.totalorder %s3954_s19, 2  ;;  %s2902_s4 = sand.u32 1, %s3926_s12  }
 0x1b1   : > { %s2903_s29 = scalar_lea.sflag [#allocation4], %s2902_s4 }
 0x1b2   : > { %p3694_p5 = pnand %p3697_p4, %p4039_p8 }
 0x1b4   : > { %3921 = dma.done.wait (!%p3694_p5), %s2903_s29, 1024  }
 0x1b5   : > { %3923 = vsyncadd (!%p3694_p5), %s2903_s29, 4294966272  ;;  %s16_s19 = sadd.s32 1, %s3954_s19   ;;  %s4859_s12 = smov %s3930_s13 }
 0x1b6   : > { %p13_p6 = scmp.ge.s32.totalorder %s16_s19, 6   ;;  %s4860_s13 = smov %s3934_s14 }
 0x1b7   : > { %s4861_s14 = smov %s4048_s30  ;;  %s4862_s15 = smov %s3946_s17 }
 0x1b8   : > { %s4863_s16 = smov %s3950_s18  ;;  %s4864_s17 = smov %s4867_s22 }
 0x1b9   : > { %s4865_s18 = smov %s4871_s23  ;;  %15 = sbr.rel (!%p13_p6) target bundleno = 5 (0x5), region = 70 }
 0x1c0   :  { %2908 = vsyncpa [#allocation4], 1 }
 0x1c1   :  { %2910 = vsyncpa [#allocation4 + $0x1], 1 }

</bundles_post_ra>
